<compile_context>
chip_gen: v7x
topology: tpu7x:2x2x1
jax: 0.10.0
libtpu: 0.0.40
codegen_flags: <defaults>
</compile_context>

<pallas_src>
import jax
import jax.numpy as jnp
from jax.experimental import pallas as pl
from jax.experimental.pallas import tpu as pltpu

# ---- synthetic "xlm-roberta-base" stand-in config (small shapes) -----------------
B = 2            # batch
S = 8            # sequence length
H = 32           # hidden size          (real model: 768)
NH = 2           # attention heads      (real model: 12)
DH = H // NH     # head dim
FF = 64          # FFN intermediate     (real model: 3072)
NUM_LAYERS = 2   # real model: 12
VOCAB = 100
NUM_CLASSES = 2
LN_EPS = 1e-5
SCALE = 1.0 / (DH ** 0.5)

BS = B * S
OUT_ROWS, OUT_LANES = 8, 128     # lane-dense output slab


def _layernorm(x, g, b):
    mu = jnp.mean(x, axis=-1, keepdims=True)
    var = jnp.mean((x - mu) ** 2, axis=-1, keepdims=True)
    return (x - mu) * jax.lax.rsqrt(var + LN_EPS) * g + b


def _gelu(x):
    # tanh-approximate GELU (EUP-friendly on TPU)
    c = jnp.float32(0.7978845608028654)  # sqrt(2/pi)
    return 0.5 * x * (1.0 + jnp.tanh(c * (x + 0.044715 * x * x * x)))


def _mm(a, w_bf16):
    """bf16 MXU matmul with f32 accumulation (used by the pure-JAX reference)."""
    return jnp.dot(a.astype(jnp.bfloat16), w_bf16, preferred_element_type=jnp.float32)


# ----------------------------- fused Pallas kernel ---------------------------------
def fused_encoder_classifier_kernel(
        h0_ref, mask_ref, onehot_ref,
        wq_ref, wk_ref, wv_ref, wo_ref, w1_ref, b1_ref, w2_ref, vecs_ref,
        wc_ref, bc_ref,
        out_ref):
    """Single program: 2 encoder layers statically unrolled, all weights VMEM-
    resident, classifier + cross-entropy epilogue, one full-tile output store."""
    h = h0_ref[...]                                       # (BS, H) f32 activation
    mask3 = mask_ref[...].reshape(B, 1, S)                # hoisted: built ONCE

    # TODO(synk): at real 12-layer / H=768 scale, stream the per-layer weights
    # over an "arbitrary" grid axis (double-buffered BlockSpecs, explicit
    # vmem_limit_bytes, W1/W2 chunked over FF) and add a leading "parallel"
    # batch-tile axis so both v7x TensorCores are active; at this toy config
    # full unrolling with resident weights is strictly cheaper.
    for l in range(NUM_LAYERS):                           # static unroll (L = 2)
        vec = vecs_ref[l]                                 # (9, H) f32 bias/LN bundle
        bq, bk, bv = vec[0:1, :], vec[1:2, :], vec[2:3, :]
        bo, g1, be1 = vec[3:4, :], vec[4:5, :], vec[5:6, :]
        b2, g2, be2 = vec[6:7, :], vec[7:8, :], vec[8:9, :]

        xb = h.astype(jnp.bfloat16)
        q = jnp.dot(xb, wq_ref[l], preferred_element_type=jnp.float32) + bq
        k = jnp.dot(xb, wk_ref[l], preferred_element_type=jnp.float32) + bk
        v = jnp.dot(xb, wv_ref[l], preferred_element_type=jnp.float32) + bv
        q3 = q.reshape(B, S, H)
        k3 = k.reshape(B, S, H)
        v3 = v.reshape(B, S, H)

        # Batched (over B) attention; heads statically unrolled (NH = 2).
        # TODO(synk): at real NH=12 fold heads into the batch dim of a single
        # (B*NH, S, DH) dot_general instead of the head unroll.
        ctx_heads = []
        for hh in range(NH):
            c = slice(hh * DH, (hh + 1) * DH)
            sc = jnp.einsum("bqd,bkd->bqk",
                            q3[..., c].astype(jnp.bfloat16),
                            k3[..., c].astype(jnp.bfloat16),
                            preferred_element_type=jnp.float32) * SCALE
            sc = sc + mask3
            sc = sc - jnp.max(sc, axis=-1, keepdims=True)
            p = jnp.exp(sc)
            p = p * pl.reciprocal(jnp.sum(p, axis=-1, keepdims=True), approx=True)
            ctx_heads.append(
                jnp.einsum("bqk,bkd->bqd",
                           p.astype(jnp.bfloat16),
                           v3[..., c].astype(jnp.bfloat16),
                           preferred_element_type=jnp.float32))        # (B, S, DH)
        ctx = jnp.concatenate(ctx_heads, axis=-1).reshape(BS, H)        # (BS, H)
        attn = jnp.dot(ctx.astype(jnp.bfloat16), wo_ref[l],
                       preferred_element_type=jnp.float32) + bo         # single K=H Wo

        h1 = _layernorm(h + attn, g1, be1)
        ff = jnp.dot(h1.astype(jnp.bfloat16), w1_ref[l],
                     preferred_element_type=jnp.float32) + b1_ref[l]
        ff = _gelu(ff)
        ff = jnp.dot(ff.astype(jnp.bfloat16), w2_ref[l],
                     preferred_element_type=jnp.float32) + b2
        h = _layernorm(h1 + ff, g2, be2)

    # ------- classifier + cross-entropy epilogue -------
    pooled = jnp.concatenate([h[b * S:b * S + 1, :] for b in range(B)], axis=0)  # CLS
    logits = jnp.dot(pooled.astype(jnp.bfloat16), wc_ref[...],
                     preferred_element_type=jnp.float32) + bc_ref[...]
    m = jnp.max(logits, axis=-1, keepdims=True)
    lse = jnp.log(jnp.sum(jnp.exp(logits - m), axis=-1, keepdims=True)) + m
    nll = lse - jnp.sum(onehot_ref[...] * logits, axis=-1, keepdims=True)
    loss = jnp.mean(nll, axis=0, keepdims=True)                                  # (1, 1)

    # Assemble the lane-dense (8, 128) slab as one value -> ONE full-tile store.
    col = jax.lax.broadcasted_iota(jnp.int32, (B, OUT_LANES), 1)
    logits_wide = jnp.where(col == 0, logits[:, 0:1],
                            jnp.where(col == 1, logits[:, 1:2], 0.0))            # (B, 128)
    loss_row = jnp.broadcast_to(loss, (1, OUT_LANES))
    pad_rows = jnp.zeros((OUT_ROWS - B - 1, OUT_LANES), jnp.float32)
    out_ref[...] = jnp.concatenate([logits_wide, loss_row, pad_rows], axis=0)


def fused_forward(h0, mask_add, onehot, p):
    # No grid: whole (small) arrays are placed in VMEM; the kernel runs once.
    return pl.pallas_call(
        fused_encoder_classifier_kernel,
        out_shape=jax.ShapeDtypeStruct((OUT_ROWS, OUT_LANES), jnp.float32),
        compiler_params=pltpu.CompilerParams(vmem_limit_bytes=32 * 1024 * 1024),
    )(h0, mask_add, onehot,
      p["wq"], p["wk"], p["wv"], p["wo"], p["w1"], p["b1"], p["w2"], p["vecs"],
      p["wc"], p["bc"])


# ----------------------------- full forward ----------------------------------------
def model_forward(params, input_ids, attention_mask, labels):
    # Embeddings (glue): word + position embedding + LayerNorm.
    emb = params["word_emb"][input_ids] + params["pos_emb"][None, :, :]
    h0 = _layernorm(emb, params["emb_ln_g"], params["emb_ln_b"])
    h0 = h0.reshape(BS, H).astype(jnp.float32)
    mask_add = (1.0 - attention_mask.astype(jnp.float32)) * jnp.float32(-1e9)  # (B, S)
    onehot = jax.nn.one_hot(labels, NUM_CLASSES, dtype=jnp.float32)

    slab = fused_forward(h0, mask_add, onehot, params)          # (8, 128)
    logits = slab[:B, :NUM_CLASSES]
    loss = slab[B, 0]
    return {"loss": loss, "logits": logits}


# ----------------------------- pure-JAX reference ----------------------------------
def ref_forward(params, input_ids, attention_mask, labels):
    emb = params["word_emb"][input_ids] + params["pos_emb"][None, :, :]
    h = _layernorm(emb, params["emb_ln_g"], params["emb_ln_b"]).astype(jnp.float32)
    mask_add = (1.0 - attention_mask.astype(jnp.float32)) * jnp.float32(-1e9)   # (B, S)
    for l in range(NUM_LAYERS):
        vec = params["vecs"][l]
        bq_, bk_, bv_ = vec[0], vec[1], vec[2]
        bo, g1, be1, b2, g2, be2 = vec[3], vec[4], vec[5], vec[6], vec[7], vec[8]
        q = _mm(h, params["wq"][l]) + bq_                        # (B, S, H) f32
        k = _mm(h, params["wk"][l]) + bk_
        v = _mm(h, params["wv"][l]) + bv_
        q4 = q.reshape(B, S, NH, DH)
        k4 = k.reshape(B, S, NH, DH)
        v4 = v.reshape(B, S, NH, DH)
        sc = jnp.einsum("bqhd,bkhd->bhqk",
                        q4.astype(jnp.bfloat16), k4.astype(jnp.bfloat16),
                        preferred_element_type=jnp.float32) * SCALE
        sc = sc + mask_add[:, None, None, :]
        sc = sc - jnp.max(sc, axis=-1, keepdims=True)
        p = jnp.exp(sc)
        p = p / jnp.sum(p, axis=-1, keepdims=True)
        ctx = jnp.einsum("bhqk,bkhd->bqhd",
                         p.astype(jnp.bfloat16), v4.astype(jnp.bfloat16),
                         preferred_element_type=jnp.float32).reshape(B, S, H)
        attn = _mm(ctx, params["wo"][l]) + bo
        h1 = _layernorm(h + attn, g1, be1)
        ff = _gelu(_mm(h1, params["w1"][l]) + params["b1"][l])
        ff = _mm(ff, params["w2"][l]) + b2
        h = _layernorm(h1 + ff, g2, be2)
    pooled = h[:, 0, :]
    logits = _mm(pooled, params["wc"]) + params["bc"]
    onehot = jax.nn.one_hot(labels, NUM_CLASSES, dtype=jnp.float32)
    m = jnp.max(logits, axis=-1, keepdims=True)
    lse = jnp.log(jnp.sum(jnp.exp(logits - m), axis=-1, keepdims=True)) + m
    loss = jnp.mean(lse[:, 0] - jnp.sum(onehot * logits, axis=-1))
    return {"loss": loss, "logits": logits}


# ----------------------------- deterministic init ----------------------------------
def init_params(key):
    def norm(k, shape, scale=0.02):
        return jax.random.normal(k, shape, jnp.float32) * scale

    keys = jax.random.split(key, 4 + NUM_LAYERS)
    wq, wk, wv, wo, w1, b1, w2, vecs = ([] for _ in range(8))
    for li in range(NUM_LAYERS):
        lk = jax.random.split(keys[4 + li], 16)
        wq.append(norm(lk[0], (H, H)))
        wk.append(norm(lk[1], (H, H)))
        wv.append(norm(lk[2], (H, H)))
        wo.append(norm(lk[3], (H, H)))
        w1.append(norm(lk[4], (H, FF)))
        w2.append(norm(lk[5], (FF, H)))
        b1.append(norm(lk[6], (1, FF)))
        bq_ = norm(lk[7], (H,))
        bk_ = norm(lk[8], (H,))
        bv_ = norm(lk[9], (H,))
        bo_ = norm(lk[10], (H,))
        g1_ = 1.0 + norm(lk[11], (H,), 0.05)
        be1_ = norm(lk[12], (H,))
        b2_ = norm(lk[13], (H,))
        g2_ = 1.0 + norm(lk[14], (H,), 0.05)
        be2_ = norm(lk[15], (H,))
        vecs.append(jnp.stack([bq_, bk_, bv_, bo_, g1_, be1_, b2_, g2_, be2_], axis=0))

    return {
        "word_emb": norm(keys[0], (VOCAB, H)),
        "pos_emb": norm(keys[1], (S, H)),
        "emb_ln_g": jnp.ones((1, H), jnp.float32),
        "emb_ln_b": jnp.zeros((1, H), jnp.float32),
        # matmul weights stored bf16 (MXU-native); biases / LN params stay f32
        "wc": norm(keys[2], (H, NUM_CLASSES)).astype(jnp.bfloat16),
        "bc": norm(keys[3], (1, NUM_CLASSES)),
        "wq": jnp.stack(wq).astype(jnp.bfloat16),
        "wk": jnp.stack(wk).astype(jnp.bfloat16),
        "wv": jnp.stack(wv).astype(jnp.bfloat16),
        "wo": jnp.stack(wo).astype(jnp.bfloat16),
        "w1": jnp.stack(w1).astype(jnp.bfloat16),
        "w2": jnp.stack(w2).astype(jnp.bfloat16),
        "b1": jnp.stack(b1).astype(jnp.float32),
        "vecs": jnp.stack(vecs).astype(jnp.float32),
    }


if __name__ == "__main__":
    # TODO(synk): pretrained-weight loading (AutoModel.from_pretrained / load_weights)
    # has no Pallas equivalent; weights are synthetic and deterministic.
    key = jax.random.PRNGKey(0)
    pkey, ikey = jax.random.split(key)
    params = init_params(pkey)

    input_ids = jax.random.randint(ikey, (B, S), 0, VOCAB, dtype=jnp.int32)
    attention_mask = jnp.array([[1, 1, 1, 1, 1, 1, 1, 1],
                                [1, 1, 1, 1, 1, 0, 0, 0]], dtype=jnp.int32)
    labels = jnp.array([0, 1], dtype=jnp.int32)

    out = jax.jit(model_forward)(params, input_ids, attention_mask, labels)
    out = jax.block_until_ready(out)

    ref = ref_forward(params, input_ids, attention_mask, labels)
    # bf16 MXU operands + approx softmax reciprocal -> slightly looser tolerance
    assert jnp.allclose(out["logits"], ref["logits"], atol=2e-3, rtol=2e-3), "logits mismatch"
    assert jnp.allclose(out["loss"], ref["loss"], atol=2e-3, rtol=2e-3), "loss mismatch"

    print("KERNEL_OK")
</pallas_src>

<mosaic_0001>
module attributes {stable_mosaic.version = 11 : i64} {
  func.func @fused_encoder_classifier_kernel(%arg0: memref<16x32xf32, #tpu.memory_space<vmem>>, %arg1: memref<2x8xf32, #tpu.memory_space<vmem>>, %arg2: memref<2x2xf32, #tpu.memory_space<vmem>>, %arg3: memref<2x32x32xbf16, #tpu.memory_space<vmem>>, %arg4: memref<2x32x32xbf16, #tpu.memory_space<vmem>>, %arg5: memref<2x32x32xbf16, #tpu.memory_space<vmem>>, %arg6: memref<2x32x32xbf16, #tpu.memory_space<vmem>>, %arg7: memref<2x32x64xbf16, #tpu.memory_space<vmem>>, %arg8: memref<2x1x64xf32, #tpu.memory_space<vmem>>, %arg9: memref<2x64x32xbf16, #tpu.memory_space<vmem>>, %arg10: memref<2x9x32xf32, #tpu.memory_space<vmem>>, %arg11: memref<32x2xbf16, #tpu.memory_space<vmem>>, %arg12: memref<1x2xf32, #tpu.memory_space<vmem>>, %arg13: memref<8x128xf32, #tpu.memory_space<vmem>>) attributes {dimension_semantics = [], scalar_prefetch = 0 : i64, scratch_operands = 0 : i64, tpu.core_type = #tpu.core_type<tc>} {
    %c0 = arith.constant 0 : index
    %c0_0 = arith.constant 0 : index
    %0 = vector.load %arg0[%c0, %c0_0] : memref<16x32xf32, #tpu.memory_space<vmem>>, vector<16x32xf32>
    %c0_1 = arith.constant 0 : index
    %c0_2 = arith.constant 0 : index
    %1 = vector.load %arg1[%c0_1, %c0_2] : memref<2x8xf32, #tpu.memory_space<vmem>>, vector<2x8xf32>
    %2 = vector.shape_cast %1 : vector<2x8xf32> to vector<2x1x8xf32>
    %c0_3 = arith.constant 0 : index
    %c0_4 = arith.constant 0 : index
    %c0_5 = arith.constant 0 : index
    %3 = vector.load %arg10[%c0_3, %c0_4, %c0_5] : memref<2x9x32xf32, #tpu.memory_space<vmem>>, vector<1x9x32xf32>
    %4 = vector.shape_cast %3 : vector<1x9x32xf32> to vector<9x32xf32>
    %5 = vector.extract_strided_slice %4 {offsets = [0, 0], sizes = [1, 32], strides = [1, 1]} : vector<9x32xf32> to vector<1x32xf32>
    %6 = vector.extract_strided_slice %4 {offsets = [1, 0], sizes = [1, 32], strides = [1, 1]} : vector<9x32xf32> to vector<1x32xf32>
    %7 = vector.extract_strided_slice %4 {offsets = [2, 0], sizes = [1, 32], strides = [1, 1]} : vector<9x32xf32> to vector<1x32xf32>
    %8 = vector.extract_strided_slice %4 {offsets = [3, 0], sizes = [1, 32], strides = [1, 1]} : vector<9x32xf32> to vector<1x32xf32>
    %9 = vector.extract_strided_slice %4 {offsets = [4, 0], sizes = [1, 32], strides = [1, 1]} : vector<9x32xf32> to vector<1x32xf32>
    %10 = vector.extract_strided_slice %4 {offsets = [5, 0], sizes = [1, 32], strides = [1, 1]} : vector<9x32xf32> to vector<1x32xf32>
    %11 = vector.extract_strided_slice %4 {offsets = [6, 0], sizes = [1, 32], strides = [1, 1]} : vector<9x32xf32> to vector<1x32xf32>
    %12 = vector.extract_strided_slice %4 {offsets = [7, 0], sizes = [1, 32], strides = [1, 1]} : vector<9x32xf32> to vector<1x32xf32>
    %13 = vector.extract_strided_slice %4 {offsets = [8, 0], sizes = [1, 32], strides = [1, 1]} : vector<9x32xf32> to vector<1x32xf32>
    %14 = arith.truncf %0 : vector<16x32xf32> to vector<16x32xbf16>
    %c0_6 = arith.constant 0 : index
    %c0_7 = arith.constant 0 : index
    %c0_8 = arith.constant 0 : index
    %15 = vector.load %arg3[%c0_6, %c0_7, %c0_8] : memref<2x32x32xbf16, #tpu.memory_space<vmem>>, vector<1x32x32xbf16>
    %16 = vector.shape_cast %15 : vector<1x32x32xbf16> to vector<32x32xbf16>
    %cst = arith.constant dense<0.000000e+00> : vector<16x32xf32>
    %17 = tpu.matmul %14, %16, %cst {dimension_numbers = #tpu.dot_dimension_numbers<[1], [0], [0], [1], [0, 0, 1, 1], [], []>} : vector<16x32xbf16>, vector<32x32xbf16>, vector<16x32xf32> -> vector<16x32xf32>
    %18 = vector.broadcast %5 : vector<1x32xf32> to vector<16x32xf32>
    %19 = arith.addf %17, %18 : vector<16x32xf32>
    %c0_9 = arith.constant 0 : index
    %c0_10 = arith.constant 0 : index
    %c0_11 = arith.constant 0 : index
    %20 = vector.load %arg4[%c0_9, %c0_10, %c0_11] : memref<2x32x32xbf16, #tpu.memory_space<vmem>>, vector<1x32x32xbf16>
    %21 = vector.shape_cast %20 : vector<1x32x32xbf16> to vector<32x32xbf16>
    %cst_12 = arith.constant dense<0.000000e+00> : vector<16x32xf32>
    %22 = tpu.matmul %14, %21, %cst_12 {dimension_numbers = #tpu.dot_dimension_numbers<[1], [0], [0], [1], [0, 0, 1, 1], [], []>} : vector<16x32xbf16>, vector<32x32xbf16>, vector<16x32xf32> -> vector<16x32xf32>
    %23 = vector.broadcast %6 : vector<1x32xf32> to vector<16x32xf32>
    %24 = arith.addf %22, %23 : vector<16x32xf32>
    %c0_13 = arith.constant 0 : index
    %c0_14 = arith.constant 0 : index
    %c0_15 = arith.constant 0 : index
    %25 = vector.load %arg5[%c0_13, %c0_14, %c0_15] : memref<2x32x32xbf16, #tpu.memory_space<vmem>>, vector<1x32x32xbf16>
    %26 = vector.shape_cast %25 : vector<1x32x32xbf16> to vector<32x32xbf16>
    %cst_16 = arith.constant dense<0.000000e+00> : vector<16x32xf32>
    %27 = tpu.matmul %14, %26, %cst_16 {dimension_numbers = #tpu.dot_dimension_numbers<[1], [0], [0], [1], [0, 0, 1, 1], [], []>} : vector<16x32xbf16>, vector<32x32xbf16>, vector<16x32xf32> -> vector<16x32xf32>
    %28 = vector.broadcast %7 : vector<1x32xf32> to vector<16x32xf32>
    %29 = arith.addf %27, %28 : vector<16x32xf32>
    %30 = vector.shape_cast %19 : vector<16x32xf32> to vector<2x8x32xf32>
    %31 = vector.shape_cast %24 : vector<16x32xf32> to vector<2x8x32xf32>
    %32 = vector.shape_cast %29 : vector<16x32xf32> to vector<2x8x32xf32>
    %33 = vector.extract_strided_slice %30 {offsets = [0, 0, 0], sizes = [2, 8, 16], strides = [1, 1, 1]} : vector<2x8x32xf32> to vector<2x8x16xf32>
    %34 = arith.truncf %33 : vector<2x8x16xf32> to vector<2x8x16xbf16>
    %35 = vector.extract_strided_slice %31 {offsets = [0, 0, 0], sizes = [2, 8, 16], strides = [1, 1, 1]} : vector<2x8x32xf32> to vector<2x8x16xf32>
    %36 = arith.truncf %35 : vector<2x8x16xf32> to vector<2x8x16xbf16>
    "tpu.trace_start"() <{level = 10 : i32, message = "bqd,bkd->bqk"}> : () -> ()
    %cst_17 = arith.constant dense<0.000000e+00> : vector<2x8x8xf32>
    %37 = tpu.matmul %34, %36, %cst_17 {dimension_numbers = #tpu.dot_dimension_numbers<[2], [2], [1], [1], [0, 0, 0, 1, 1, 1], [0], [0]>} : vector<2x8x16xbf16>, vector<2x8x16xbf16>, vector<2x8x8xf32> -> vector<2x8x8xf32>
    "tpu.trace_stop"() : () -> ()
    %cst_18 = arith.constant 2.500000e-01 : f32
    %38 = vector.broadcast %cst_18 : f32 to vector<2x8x8xf32>
    %39 = arith.mulf %37, %38 : vector<2x8x8xf32>
    %40 = vector.broadcast %2 : vector<2x1x8xf32> to vector<2x8x8xf32>
    %41 = arith.addf %39, %40 : vector<2x8x8xf32>
    %cst_19 = arith.constant dense<0xFF800000> : vector<2x8xf32>
    %42 = vector.multi_reduction <maximumf>, %41, %cst_19 [2] : vector<2x8x8xf32> to vector<2x8xf32>
    %43 = vector.shape_cast %42 : vector<2x8xf32> to vector<2x8x1xf32>
    %44 = vector.broadcast %43 : vector<2x8x1xf32> to vector<2x8x8xf32>
    %45 = arith.subf %41, %44 : vector<2x8x8xf32>
    %46 = math.exp %45 : vector<2x8x8xf32>
    %cst_20 = arith.constant dense<0.000000e+00> : vector<2x8xf32>
    %47 = vector.multi_reduction <add>, %46, %cst_20 [2] : vector<2x8x8xf32> to vector<2x8xf32>
    %48 = vector.shape_cast %47 : vector<2x8xf32> to vector<2x8x1xf32>
    %49 = tpu.reciprocal %48 {approx = true} : vector<2x8x1xf32> -> vector<2x8x1xf32>
    %50 = vector.broadcast %49 : vector<2x8x1xf32> to vector<2x8x8xf32>
    %51 = arith.mulf %46, %50 : vector<2x8x8xf32>
    %52 = arith.truncf %51 : vector<2x8x8xf32> to vector<2x8x8xbf16>
    %53 = vector.extract_strided_slice %32 {offsets = [0, 0, 0], sizes = [2, 8, 16], strides = [1, 1, 1]} : vector<2x8x32xf32> to vector<2x8x16xf32>
    %54 = arith.truncf %53 : vector<2x8x16xf32> to vector<2x8x16xbf16>
    "tpu.trace_start"() <{level = 10 : i32, message = "bqk,bkd->bqd"}> : () -> ()
    %cst_21 = arith.constant dense<0.000000e+00> : vector<2x8x16xf32>
    %55 = tpu.matmul %52, %54, %cst_21 {dimension_numbers = #tpu.dot_dimension_numbers<[2], [1], [1], [2], [0, 0, 0, 1, 1, 2], [0], [0]>} : vector<2x8x8xbf16>, vector<2x8x16xbf16>, vector<2x8x16xf32> -> vector<2x8x16xf32>
    "tpu.trace_stop"() : () -> ()
    %56 = vector.extract_strided_slice %30 {offsets = [0, 0, 16], sizes = [2, 8, 16], strides = [1, 1, 1]} : vector<2x8x32xf32> to vector<2x8x16xf32>
    %57 = arith.truncf %56 : vector<2x8x16xf32> to vector<2x8x16xbf16>
    %58 = vector.extract_strided_slice %31 {offsets = [0, 0, 16], sizes = [2, 8, 16], strides = [1, 1, 1]} : vector<2x8x32xf32> to vector<2x8x16xf32>
    %59 = arith.truncf %58 : vector<2x8x16xf32> to vector<2x8x16xbf16>
    "tpu.trace_start"() <{level = 10 : i32, message = "bqd,bkd->bqk"}> : () -> ()
    %cst_22 = arith.constant dense<0.000000e+00> : vector<2x8x8xf32>
    %60 = tpu.matmul %57, %59, %cst_22 {dimension_numbers = #tpu.dot_dimension_numbers<[2], [2], [1], [1], [0, 0, 0, 1, 1, 1], [0], [0]>} : vector<2x8x16xbf16>, vector<2x8x16xbf16>, vector<2x8x8xf32> -> vector<2x8x8xf32>
    "tpu.trace_stop"() : () -> ()
    %cst_23 = arith.constant 2.500000e-01 : f32
    %61 = vector.broadcast %cst_23 : f32 to vector<2x8x8xf32>
    %62 = arith.mulf %60, %61 : vector<2x8x8xf32>
    %63 = vector.broadcast %2 : vector<2x1x8xf32> to vector<2x8x8xf32>
    %64 = arith.addf %62, %63 : vector<2x8x8xf32>
    %cst_24 = arith.constant dense<0xFF800000> : vector<2x8xf32>
    %65 = vector.multi_reduction <maximumf>, %64, %cst_24 [2] : vector<2x8x8xf32> to vector<2x8xf32>
    %66 = vector.shape_cast %65 : vector<2x8xf32> to vector<2x8x1xf32>
    %67 = vector.broadcast %66 : vector<2x8x1xf32> to vector<2x8x8xf32>
    %68 = arith.subf %64, %67 : vector<2x8x8xf32>
    %69 = math.exp %68 : vector<2x8x8xf32>
    %cst_25 = arith.constant dense<0.000000e+00> : vector<2x8xf32>
    %70 = vector.multi_reduction <add>, %69, %cst_25 [2] : vector<2x8x8xf32> to vector<2x8xf32>
    %71 = vector.shape_cast %70 : vector<2x8xf32> to vector<2x8x1xf32>
    %72 = tpu.reciprocal %71 {approx = true} : vector<2x8x1xf32> -> vector<2x8x1xf32>
    %73 = vector.broadcast %72 : vector<2x8x1xf32> to vector<2x8x8xf32>
    %74 = arith.mulf %69, %73 : vector<2x8x8xf32>
    %75 = arith.truncf %74 : vector<2x8x8xf32> to vector<2x8x8xbf16>
    %76 = vector.extract_strided_slice %32 {offsets = [0, 0, 16], sizes = [2, 8, 16], strides = [1, 1, 1]} : vector<2x8x32xf32> to vector<2x8x16xf32>
    %77 = arith.truncf %76 : vector<2x8x16xf32> to vector<2x8x16xbf16>
    "tpu.trace_start"() <{level = 10 : i32, message = "bqk,bkd->bqd"}> : () -> ()
    %cst_26 = arith.constant dense<0.000000e+00> : vector<2x8x16xf32>
    %78 = tpu.matmul %75, %77, %cst_26 {dimension_numbers = #tpu.dot_dimension_numbers<[2], [1], [1], [2], [0, 0, 0, 1, 1, 2], [0], [0]>} : vector<2x8x8xbf16>, vector<2x8x16xbf16>, vector<2x8x16xf32> -> vector<2x8x16xf32>
    "tpu.trace_stop"() : () -> ()
    %79 = tpu.concatenate %55, %78 in 2 : vector<2x8x16xf32>, vector<2x8x16xf32> -> vector<2x8x32xf32>
    %80 = vector.shape_cast %79 : vector<2x8x32xf32> to vector<16x32xf32>
    %81 = arith.truncf %80 : vector<16x32xf32> to vector<16x32xbf16>
    %c0_27 = arith.constant 0 : index
    %c0_28 = arith.constant 0 : index
    %c0_29 = arith.constant 0 : index
    %82 = vector.load %arg6[%c0_27, %c0_28, %c0_29] : memref<2x32x32xbf16, #tpu.memory_space<vmem>>, vector<1x32x32xbf16>
    %83 = vector.shape_cast %82 : vector<1x32x32xbf16> to vector<32x32xbf16>
    %cst_30 = arith.constant dense<0.000000e+00> : vector<16x32xf32>
    %84 = tpu.matmul %81, %83, %cst_30 {dimension_numbers = #tpu.dot_dimension_numbers<[1], [0], [0], [1], [0, 0, 1, 1], [], []>} : vector<16x32xbf16>, vector<32x32xbf16>, vector<16x32xf32> -> vector<16x32xf32>
    %85 = vector.broadcast %8 : vector<1x32xf32> to vector<16x32xf32>
    %86 = arith.addf %84, %85 : vector<16x32xf32>
    %87 = arith.addf %0, %86 : vector<16x32xf32>
    %cst_31 = arith.constant dense<0.000000e+00> : vector<16xf32>
    %88 = vector.multi_reduction <add>, %87, %cst_31 [1] : vector<16x32xf32> to vector<16xf32>
    %89 = vector.shape_cast %88 : vector<16xf32> to vector<16x1xf32>
    %cst_32 = arith.constant 3.200000e+01 : f32
    %90 = vector.broadcast %cst_32 : f32 to vector<16x1xf32>
    %91 = arith.divf %89, %90 : vector<16x1xf32>
    %92 = vector.broadcast %91 : vector<16x1xf32> to vector<16x32xf32>
    %93 = arith.subf %87, %92 : vector<16x32xf32>
    %94 = arith.mulf %93, %93 : vector<16x32xf32>
    %cst_33 = arith.constant dense<0.000000e+00> : vector<16xf32>
    %95 = vector.multi_reduction <add>, %94, %cst_33 [1] : vector<16x32xf32> to vector<16xf32>
    %96 = vector.shape_cast %95 : vector<16xf32> to vector<16x1xf32>
    %cst_34 = arith.constant 3.200000e+01 : f32
    %97 = vector.broadcast %cst_34 : f32 to vector<16x1xf32>
    %98 = arith.divf %96, %97 : vector<16x1xf32>
    %99 = vector.broadcast %91 : vector<16x1xf32> to vector<16x32xf32>
    %100 = arith.subf %87, %99 : vector<16x32xf32>
    %cst_35 = arith.constant 9.99999974E-6 : f32
    %101 = vector.broadcast %cst_35 : f32 to vector<16x1xf32>
    %102 = arith.addf %98, %101 : vector<16x1xf32>
    %103 = math.rsqrt %102 : vector<16x1xf32>
    %104 = vector.broadcast %103 : vector<16x1xf32> to vector<16x32xf32>
    %105 = arith.mulf %100, %104 : vector<16x32xf32>
    %106 = vector.broadcast %9 : vector<1x32xf32> to vector<16x32xf32>
    %107 = arith.mulf %105, %106 : vector<16x32xf32>
    %108 = vector.broadcast %10 : vector<1x32xf32> to vector<16x32xf32>
    %109 = arith.addf %107, %108 : vector<16x32xf32>
    %110 = arith.truncf %109 : vector<16x32xf32> to vector<16x32xbf16>
    %c0_36 = arith.constant 0 : index
    %c0_37 = arith.constant 0 : index
    %c0_38 = arith.constant 0 : index
    %111 = vector.load %arg7[%c0_36, %c0_37, %c0_38] : memref<2x32x64xbf16, #tpu.memory_space<vmem>>, vector<1x32x64xbf16>
    %112 = vector.shape_cast %111 : vector<1x32x64xbf16> to vector<32x64xbf16>
    %cst_39 = arith.constant dense<0.000000e+00> : vector<16x64xf32>
    %113 = tpu.matmul %110, %112, %cst_39 {dimension_numbers = #tpu.dot_dimension_numbers<[1], [0], [0], [1], [0, 0, 1, 1], [], []>} : vector<16x32xbf16>, vector<32x64xbf16>, vector<16x64xf32> -> vector<16x64xf32>
    %c0_40 = arith.constant 0 : index
    %c0_41 = arith.constant 0 : index
    %c0_42 = arith.constant 0 : index
    %114 = vector.load %arg8[%c0_40, %c0_41, %c0_42] : memref<2x1x64xf32, #tpu.memory_space<vmem>>, vector<1x1x64xf32>
    %115 = vector.shape_cast %114 : vector<1x1x64xf32> to vector<1x64xf32>
    %116 = vector.broadcast %115 : vector<1x64xf32> to vector<16x64xf32>
    %117 = arith.addf %113, %116 : vector<16x64xf32>
    %cst_43 = arith.constant 5.000000e-01 : f32
    %118 = vector.broadcast %cst_43 : f32 to vector<16x64xf32>
    %119 = arith.mulf %118, %117 : vector<16x64xf32>
    %cst_44 = arith.constant 4.471500e-02 : f32
    %120 = vector.broadcast %cst_44 : f32 to vector<16x64xf32>
    %121 = arith.mulf %120, %117 : vector<16x64xf32>
    %122 = arith.mulf %121, %117 : vector<16x64xf32>
    %123 = arith.mulf %122, %117 : vector<16x64xf32>
    %124 = arith.addf %117, %123 : vector<16x64xf32>
    %cst_45 = arith.constant 0.797884583 : f32
    %125 = vector.broadcast %cst_45 : f32 to vector<16x64xf32>
    %126 = arith.mulf %125, %124 : vector<16x64xf32>
    %127 = math.tanh %126 : vector<16x64xf32>
    %cst_46 = arith.constant 1.000000e+00 : f32
    %128 = vector.broadcast %cst_46 : f32 to vector<16x64xf32>
    %129 = arith.addf %128, %127 : vector<16x64xf32>
    %130 = arith.mulf %119, %129 : vector<16x64xf32>
    %131 = arith.truncf %130 : vector<16x64xf32> to vector<16x64xbf16>
    %c0_47 = arith.constant 0 : index
    %c0_48 = arith.constant 0 : index
    %c0_49 = arith.constant 0 : index
    %132 = vector.load %arg9[%c0_47, %c0_48, %c0_49] : memref<2x64x32xbf16, #tpu.memory_space<vmem>>, vector<1x64x32xbf16>
    %133 = vector.shape_cast %132 : vector<1x64x32xbf16> to vector<64x32xbf16>
    %cst_50 = arith.constant dense<0.000000e+00> : vector<16x32xf32>
    %134 = tpu.matmul %131, %133, %cst_50 {dimension_numbers = #tpu.dot_dimension_numbers<[1], [0], [0], [1], [0, 0, 1, 1], [], []>} : vector<16x64xbf16>, vector<64x32xbf16>, vector<16x32xf32> -> vector<16x32xf32>
    %135 = vector.broadcast %11 : vector<1x32xf32> to vector<16x32xf32>
    %136 = arith.addf %134, %135 : vector<16x32xf32>
    %137 = arith.addf %109, %136 : vector<16x32xf32>
    %cst_51 = arith.constant dense<0.000000e+00> : vector<16xf32>
    %138 = vector.multi_reduction <add>, %137, %cst_51 [1] : vector<16x32xf32> to vector<16xf32>
    %139 = vector.shape_cast %138 : vector<16xf32> to vector<16x1xf32>
    %cst_52 = arith.constant 3.200000e+01 : f32
    %140 = vector.broadcast %cst_52 : f32 to vector<16x1xf32>
    %141 = arith.divf %139, %140 : vector<16x1xf32>
    %142 = vector.broadcast %141 : vector<16x1xf32> to vector<16x32xf32>
    %143 = arith.subf %137, %142 : vector<16x32xf32>
    %144 = arith.mulf %143, %143 : vector<16x32xf32>
    %cst_53 = arith.constant dense<0.000000e+00> : vector<16xf32>
    %145 = vector.multi_reduction <add>, %144, %cst_53 [1] : vector<16x32xf32> to vector<16xf32>
    %146 = vector.shape_cast %145 : vector<16xf32> to vector<16x1xf32>
    %cst_54 = arith.constant 3.200000e+01 : f32
    %147 = vector.broadcast %cst_54 : f32 to vector<16x1xf32>
    %148 = arith.divf %146, %147 : vector<16x1xf32>
    %149 = vector.broadcast %141 : vector<16x1xf32> to vector<16x32xf32>
    %150 = arith.subf %137, %149 : vector<16x32xf32>
    %cst_55 = arith.constant 9.99999974E-6 : f32
    %151 = vector.broadcast %cst_55 : f32 to vector<16x1xf32>
    %152 = arith.addf %148, %151 : vector<16x1xf32>
    %153 = math.rsqrt %152 : vector<16x1xf32>
    %154 = vector.broadcast %153 : vector<16x1xf32> to vector<16x32xf32>
    %155 = arith.mulf %150, %154 : vector<16x32xf32>
    %156 = vector.broadcast %12 : vector<1x32xf32> to vector<16x32xf32>
    %157 = arith.mulf %155, %156 : vector<16x32xf32>
    %158 = vector.broadcast %13 : vector<1x32xf32> to vector<16x32xf32>
    %159 = arith.addf %157, %158 : vector<16x32xf32>
    %c1 = arith.constant 1 : index
    %c0_56 = arith.constant 0 : index
    %c0_57 = arith.constant 0 : index
    %160 = vector.load %arg10[%c1, %c0_56, %c0_57] : memref<2x9x32xf32, #tpu.memory_space<vmem>>, vector<1x9x32xf32>
    %161 = vector.shape_cast %160 : vector<1x9x32xf32> to vector<9x32xf32>
    %162 = vector.extract_strided_slice %161 {offsets = [0, 0], sizes = [1, 32], strides = [1, 1]} : vector<9x32xf32> to vector<1x32xf32>
    %163 = vector.extract_strided_slice %161 {offsets = [1, 0], sizes = [1, 32], strides = [1, 1]} : vector<9x32xf32> to vector<1x32xf32>
    %164 = vector.extract_strided_slice %161 {offsets = [2, 0], sizes = [1, 32], strides = [1, 1]} : vector<9x32xf32> to vector<1x32xf32>
    %165 = vector.extract_strided_slice %161 {offsets = [3, 0], sizes = [1, 32], strides = [1, 1]} : vector<9x32xf32> to vector<1x32xf32>
    %166 = vector.extract_strided_slice %161 {offsets = [4, 0], sizes = [1, 32], strides = [1, 1]} : vector<9x32xf32> to vector<1x32xf32>
    %167 = vector.extract_strided_slice %161 {offsets = [5, 0], sizes = [1, 32], strides = [1, 1]} : vector<9x32xf32> to vector<1x32xf32>
    %168 = vector.extract_strided_slice %161 {offsets = [6, 0], sizes = [1, 32], strides = [1, 1]} : vector<9x32xf32> to vector<1x32xf32>
    %169 = vector.extract_strided_slice %161 {offsets = [7, 0], sizes = [1, 32], strides = [1, 1]} : vector<9x32xf32> to vector<1x32xf32>
    %170 = vector.extract_strided_slice %161 {offsets = [8, 0], sizes = [1, 32], strides = [1, 1]} : vector<9x32xf32> to vector<1x32xf32>
    %171 = arith.truncf %159 : vector<16x32xf32> to vector<16x32xbf16>
    %c1_58 = arith.constant 1 : index
    %c0_59 = arith.constant 0 : index
    %c0_60 = arith.constant 0 : index
    %172 = vector.load %arg3[%c1_58, %c0_59, %c0_60] : memref<2x32x32xbf16, #tpu.memory_space<vmem>>, vector<1x32x32xbf16>
    %173 = vector.shape_cast %172 : vector<1x32x32xbf16> to vector<32x32xbf16>
    %cst_61 = arith.constant dense<0.000000e+00> : vector<16x32xf32>
    %174 = tpu.matmul %171, %173, %cst_61 {dimension_numbers = #tpu.dot_dimension_numbers<[1], [0], [0], [1], [0, 0, 1, 1], [], []>} : vector<16x32xbf16>, vector<32x32xbf16>, vector<16x32xf32> -> vector<16x32xf32>
    %175 = vector.broadcast %162 : vector<1x32xf32> to vector<16x32xf32>
    %176 = arith.addf %174, %175 : vector<16x32xf32>
    %c1_62 = arith.constant 1 : index
    %c0_63 = arith.constant 0 : index
    %c0_64 = arith.constant 0 : index
    %177 = vector.load %arg4[%c1_62, %c0_63, %c0_64] : memref<2x32x32xbf16, #tpu.memory_space<vmem>>, vector<1x32x32xbf16>
    %178 = vector.shape_cast %177 : vector<1x32x32xbf16> to vector<32x32xbf16>
    %cst_65 = arith.constant dense<0.000000e+00> : vector<16x32xf32>
    %179 = tpu.matmul %171, %178, %cst_65 {dimension_numbers = #tpu.dot_dimension_numbers<[1], [0], [0], [1], [0, 0, 1, 1], [], []>} : vector<16x32xbf16>, vector<32x32xbf16>, vector<16x32xf32> -> vector<16x32xf32>
    %180 = vector.broadcast %163 : vector<1x32xf32> to vector<16x32xf32>
    %181 = arith.addf %179, %180 : vector<16x32xf32>
    %c1_66 = arith.constant 1 : index
    %c0_67 = arith.constant 0 : index
    %c0_68 = arith.constant 0 : index
    %182 = vector.load %arg5[%c1_66, %c0_67, %c0_68] : memref<2x32x32xbf16, #tpu.memory_space<vmem>>, vector<1x32x32xbf16>
    %183 = vector.shape_cast %182 : vector<1x32x32xbf16> to vector<32x32xbf16>
    %cst_69 = arith.constant dense<0.000000e+00> : vector<16x32xf32>
    %184 = tpu.matmul %171, %183, %cst_69 {dimension_numbers = #tpu.dot_dimension_numbers<[1], [0], [0], [1], [0, 0, 1, 1], [], []>} : vector<16x32xbf16>, vector<32x32xbf16>, vector<16x32xf32> -> vector<16x32xf32>
    %185 = vector.broadcast %164 : vector<1x32xf32> to vector<16x32xf32>
    %186 = arith.addf %184, %185 : vector<16x32xf32>
    %187 = vector.shape_cast %176 : vector<16x32xf32> to vector<2x8x32xf32>
    %188 = vector.shape_cast %181 : vector<16x32xf32> to vector<2x8x32xf32>
    %189 = vector.shape_cast %186 : vector<16x32xf32> to vector<2x8x32xf32>
    %190 = vector.extract_strided_slice %187 {offsets = [0, 0, 0], sizes = [2, 8, 16], strides = [1, 1, 1]} : vector<2x8x32xf32> to vector<2x8x16xf32>
    %191 = arith.truncf %190 : vector<2x8x16xf32> to vector<2x8x16xbf16>
    %192 = vector.extract_strided_slice %188 {offsets = [0, 0, 0], sizes = [2, 8, 16], strides = [1, 1, 1]} : vector<2x8x32xf32> to vector<2x8x16xf32>
    %193 = arith.truncf %192 : vector<2x8x16xf32> to vector<2x8x16xbf16>
    "tpu.trace_start"() <{level = 10 : i32, message = "bqd,bkd->bqk"}> : () -> ()
    %cst_70 = arith.constant dense<0.000000e+00> : vector<2x8x8xf32>
    %194 = tpu.matmul %191, %193, %cst_70 {dimension_numbers = #tpu.dot_dimension_numbers<[2], [2], [1], [1], [0, 0, 0, 1, 1, 1], [0], [0]>} : vector<2x8x16xbf16>, vector<2x8x16xbf16>, vector<2x8x8xf32> -> vector<2x8x8xf32>
    "tpu.trace_stop"() : () -> ()
    %cst_71 = arith.constant 2.500000e-01 : f32
    %195 = vector.broadcast %cst_71 : f32 to vector<2x8x8xf32>
    %196 = arith.mulf %194, %195 : vector<2x8x8xf32>
    %197 = vector.broadcast %2 : vector<2x1x8xf32> to vector<2x8x8xf32>
    %198 = arith.addf %196, %197 : vector<2x8x8xf32>
    %cst_72 = arith.constant dense<0xFF800000> : vector<2x8xf32>
    %199 = vector.multi_reduction <maximumf>, %198, %cst_72 [2] : vector<2x8x8xf32> to vector<2x8xf32>
    %200 = vector.shape_cast %199 : vector<2x8xf32> to vector<2x8x1xf32>
    %201 = vector.broadcast %200 : vector<2x8x1xf32> to vector<2x8x8xf32>
    %202 = arith.subf %198, %201 : vector<2x8x8xf32>
    %203 = math.exp %202 : vector<2x8x8xf32>
    %cst_73 = arith.constant dense<0.000000e+00> : vector<2x8xf32>
    %204 = vector.multi_reduction <add>, %203, %cst_73 [2] : vector<2x8x8xf32> to vector<2x8xf32>
    %205 = vector.shape_cast %204 : vector<2x8xf32> to vector<2x8x1xf32>
    %206 = tpu.reciprocal %205 {approx = true} : vector<2x8x1xf32> -> vector<2x8x1xf32>
    %207 = vector.broadcast %206 : vector<2x8x1xf32> to vector<2x8x8xf32>
    %208 = arith.mulf %203, %207 : vector<2x8x8xf32>
    %209 = arith.truncf %208 : vector<2x8x8xf32> to vector<2x8x8xbf16>
    %210 = vector.extract_strided_slice %189 {offsets = [0, 0, 0], sizes = [2, 8, 16], strides = [1, 1, 1]} : vector<2x8x32xf32> to vector<2x8x16xf32>
    %211 = arith.truncf %210 : vector<2x8x16xf32> to vector<2x8x16xbf16>
    "tpu.trace_start"() <{level = 10 : i32, message = "bqk,bkd->bqd"}> : () -> ()
    %cst_74 = arith.constant dense<0.000000e+00> : vector<2x8x16xf32>
    %212 = tpu.matmul %209, %211, %cst_74 {dimension_numbers = #tpu.dot_dimension_numbers<[2], [1], [1], [2], [0, 0, 0, 1, 1, 2], [0], [0]>} : vector<2x8x8xbf16>, vector<2x8x16xbf16>, vector<2x8x16xf32> -> vector<2x8x16xf32>
    "tpu.trace_stop"() : () -> ()
    %213 = vector.extract_strided_slice %187 {offsets = [0, 0, 16], sizes = [2, 8, 16], strides = [1, 1, 1]} : vector<2x8x32xf32> to vector<2x8x16xf32>
    %214 = arith.truncf %213 : vector<2x8x16xf32> to vector<2x8x16xbf16>
    %215 = vector.extract_strided_slice %188 {offsets = [0, 0, 16], sizes = [2, 8, 16], strides = [1, 1, 1]} : vector<2x8x32xf32> to vector<2x8x16xf32>
    %216 = arith.truncf %215 : vector<2x8x16xf32> to vector<2x8x16xbf16>
    "tpu.trace_start"() <{level = 10 : i32, message = "bqd,bkd->bqk"}> : () -> ()
    %cst_75 = arith.constant dense<0.000000e+00> : vector<2x8x8xf32>
    %217 = tpu.matmul %214, %216, %cst_75 {dimension_numbers = #tpu.dot_dimension_numbers<[2], [2], [1], [1], [0, 0, 0, 1, 1, 1], [0], [0]>} : vector<2x8x16xbf16>, vector<2x8x16xbf16>, vector<2x8x8xf32> -> vector<2x8x8xf32>
    "tpu.trace_stop"() : () -> ()
    %cst_76 = arith.constant 2.500000e-01 : f32
    %218 = vector.broadcast %cst_76 : f32 to vector<2x8x8xf32>
    %219 = arith.mulf %217, %218 : vector<2x8x8xf32>
    %220 = vector.broadcast %2 : vector<2x1x8xf32> to vector<2x8x8xf32>
    %221 = arith.addf %219, %220 : vector<2x8x8xf32>
    %cst_77 = arith.constant dense<0xFF800000> : vector<2x8xf32>
    %222 = vector.multi_reduction <maximumf>, %221, %cst_77 [2] : vector<2x8x8xf32> to vector<2x8xf32>
    %223 = vector.shape_cast %222 : vector<2x8xf32> to vector<2x8x1xf32>
    %224 = vector.broadcast %223 : vector<2x8x1xf32> to vector<2x8x8xf32>
    %225 = arith.subf %221, %224 : vector<2x8x8xf32>
    %226 = math.exp %225 : vector<2x8x8xf32>
    %cst_78 = arith.constant dense<0.000000e+00> : vector<2x8xf32>
    %227 = vector.multi_reduction <add>, %226, %cst_78 [2] : vector<2x8x8xf32> to vector<2x8xf32>
    %228 = vector.shape_cast %227 : vector<2x8xf32> to vector<2x8x1xf32>
    %229 = tpu.reciprocal %228 {approx = true} : vector<2x8x1xf32> -> vector<2x8x1xf32>
    %230 = vector.broadcast %229 : vector<2x8x1xf32> to vector<2x8x8xf32>
    %231 = arith.mulf %226, %230 : vector<2x8x8xf32>
    %232 = arith.truncf %231 : vector<2x8x8xf32> to vector<2x8x8xbf16>
    %233 = vector.extract_strided_slice %189 {offsets = [0, 0, 16], sizes = [2, 8, 16], strides = [1, 1, 1]} : vector<2x8x32xf32> to vector<2x8x16xf32>
    %234 = arith.truncf %233 : vector<2x8x16xf32> to vector<2x8x16xbf16>
    "tpu.trace_start"() <{level = 10 : i32, message = "bqk,bkd->bqd"}> : () -> ()
    %cst_79 = arith.constant dense<0.000000e+00> : vector<2x8x16xf32>
    %235 = tpu.matmul %232, %234, %cst_79 {dimension_numbers = #tpu.dot_dimension_numbers<[2], [1], [1], [2], [0, 0, 0, 1, 1, 2], [0], [0]>} : vector<2x8x8xbf16>, vector<2x8x16xbf16>, vector<2x8x16xf32> -> vector<2x8x16xf32>
    "tpu.trace_stop"() : () -> ()
    %236 = tpu.concatenate %212, %235 in 2 : vector<2x8x16xf32>, vector<2x8x16xf32> -> vector<2x8x32xf32>
    %237 = vector.shape_cast %236 : vector<2x8x32xf32> to vector<16x32xf32>
    %238 = arith.truncf %237 : vector<16x32xf32> to vector<16x32xbf16>
    %c1_80 = arith.constant 1 : index
    %c0_81 = arith.constant 0 : index
    %c0_82 = arith.constant 0 : index
    %239 = vector.load %arg6[%c1_80, %c0_81, %c0_82] : memref<2x32x32xbf16, #tpu.memory_space<vmem>>, vector<1x32x32xbf16>
    %240 = vector.shape_cast %239 : vector<1x32x32xbf16> to vector<32x32xbf16>
    %cst_83 = arith.constant dense<0.000000e+00> : vector<16x32xf32>
    %241 = tpu.matmul %238, %240, %cst_83 {dimension_numbers = #tpu.dot_dimension_numbers<[1], [0], [0], [1], [0, 0, 1, 1], [], []>} : vector<16x32xbf16>, vector<32x32xbf16>, vector<16x32xf32> -> vector<16x32xf32>
    %242 = vector.broadcast %165 : vector<1x32xf32> to vector<16x32xf32>
    %243 = arith.addf %241, %242 : vector<16x32xf32>
    %244 = arith.addf %159, %243 : vector<16x32xf32>
    %cst_84 = arith.constant dense<0.000000e+00> : vector<16xf32>
    %245 = vector.multi_reduction <add>, %244, %cst_84 [1] : vector<16x32xf32> to vector<16xf32>
    %246 = vector.shape_cast %245 : vector<16xf32> to vector<16x1xf32>
    %cst_85 = arith.constant 3.200000e+01 : f32
    %247 = vector.broadcast %cst_85 : f32 to vector<16x1xf32>
    %248 = arith.divf %246, %247 : vector<16x1xf32>
    %249 = vector.broadcast %248 : vector<16x1xf32> to vector<16x32xf32>
    %250 = arith.subf %244, %249 : vector<16x32xf32>
    %251 = arith.mulf %250, %250 : vector<16x32xf32>
    %cst_86 = arith.constant dense<0.000000e+00> : vector<16xf32>
    %252 = vector.multi_reduction <add>, %251, %cst_86 [1] : vector<16x32xf32> to vector<16xf32>
    %253 = vector.shape_cast %252 : vector<16xf32> to vector<16x1xf32>
    %cst_87 = arith.constant 3.200000e+01 : f32
    %254 = vector.broadcast %cst_87 : f32 to vector<16x1xf32>
    %255 = arith.divf %253, %254 : vector<16x1xf32>
    %256 = vector.broadcast %248 : vector<16x1xf32> to vector<16x32xf32>
    %257 = arith.subf %244, %256 : vector<16x32xf32>
    %cst_88 = arith.constant 9.99999974E-6 : f32
    %258 = vector.broadcast %cst_88 : f32 to vector<16x1xf32>
    %259 = arith.addf %255, %258 : vector<16x1xf32>
    %260 = math.rsqrt %259 : vector<16x1xf32>
    %261 = vector.broadcast %260 : vector<16x1xf32> to vector<16x32xf32>
    %262 = arith.mulf %257, %261 : vector<16x32xf32>
    %263 = vector.broadcast %166 : vector<1x32xf32> to vector<16x32xf32>
    %264 = arith.mulf %262, %263 : vector<16x32xf32>
    %265 = vector.broadcast %167 : vector<1x32xf32> to vector<16x32xf32>
    %266 = arith.addf %264, %265 : vector<16x32xf32>
    %267 = arith.truncf %266 : vector<16x32xf32> to vector<16x32xbf16>
    %c1_89 = arith.constant 1 : index
    %c0_90 = arith.constant 0 : index
    %c0_91 = arith.constant 0 : index
    %268 = vector.load %arg7[%c1_89, %c0_90, %c0_91] : memref<2x32x64xbf16, #tpu.memory_space<vmem>>, vector<1x32x64xbf16>
    %269 = vector.shape_cast %268 : vector<1x32x64xbf16> to vector<32x64xbf16>
    %cst_92 = arith.constant dense<0.000000e+00> : vector<16x64xf32>
    %270 = tpu.matmul %267, %269, %cst_92 {dimension_numbers = #tpu.dot_dimension_numbers<[1], [0], [0], [1], [0, 0, 1, 1], [], []>} : vector<16x32xbf16>, vector<32x64xbf16>, vector<16x64xf32> -> vector<16x64xf32>
    %c1_93 = arith.constant 1 : index
    %c0_94 = arith.constant 0 : index
    %c0_95 = arith.constant 0 : index
    %271 = vector.load %arg8[%c1_93, %c0_94, %c0_95] : memref<2x1x64xf32, #tpu.memory_space<vmem>>, vector<1x1x64xf32>
    %272 = vector.shape_cast %271 : vector<1x1x64xf32> to vector<1x64xf32>
    %273 = vector.broadcast %272 : vector<1x64xf32> to vector<16x64xf32>
    %274 = arith.addf %270, %273 : vector<16x64xf32>
    %cst_96 = arith.constant 5.000000e-01 : f32
    %275 = vector.broadcast %cst_96 : f32 to vector<16x64xf32>
    %276 = arith.mulf %275, %274 : vector<16x64xf32>
    %cst_97 = arith.constant 4.471500e-02 : f32
    %277 = vector.broadcast %cst_97 : f32 to vector<16x64xf32>
    %278 = arith.mulf %277, %274 : vector<16x64xf32>
    %279 = arith.mulf %278, %274 : vector<16x64xf32>
    %280 = arith.mulf %279, %274 : vector<16x64xf32>
    %281 = arith.addf %274, %280 : vector<16x64xf32>
    %cst_98 = arith.constant 0.797884583 : f32
    %282 = vector.broadcast %cst_98 : f32 to vector<16x64xf32>
    %283 = arith.mulf %282, %281 : vector<16x64xf32>
    %284 = math.tanh %283 : vector<16x64xf32>
    %cst_99 = arith.constant 1.000000e+00 : f32
    %285 = vector.broadcast %cst_99 : f32 to vector<16x64xf32>
    %286 = arith.addf %285, %284 : vector<16x64xf32>
    %287 = arith.mulf %276, %286 : vector<16x64xf32>
    %288 = arith.truncf %287 : vector<16x64xf32> to vector<16x64xbf16>
    %c1_100 = arith.constant 1 : index
    %c0_101 = arith.constant 0 : index
    %c0_102 = arith.constant 0 : index
    %289 = vector.load %arg9[%c1_100, %c0_101, %c0_102] : memref<2x64x32xbf16, #tpu.memory_space<vmem>>, vector<1x64x32xbf16>
    %290 = vector.shape_cast %289 : vector<1x64x32xbf16> to vector<64x32xbf16>
    %cst_103 = arith.constant dense<0.000000e+00> : vector<16x32xf32>
    %291 = tpu.matmul %288, %290, %cst_103 {dimension_numbers = #tpu.dot_dimension_numbers<[1], [0], [0], [1], [0, 0, 1, 1], [], []>} : vector<16x64xbf16>, vector<64x32xbf16>, vector<16x32xf32> -> vector<16x32xf32>
    %292 = vector.broadcast %168 : vector<1x32xf32> to vector<16x32xf32>
    %293 = arith.addf %291, %292 : vector<16x32xf32>
    %294 = arith.addf %266, %293 : vector<16x32xf32>
    %cst_104 = arith.constant dense<0.000000e+00> : vector<16xf32>
    %295 = vector.multi_reduction <add>, %294, %cst_104 [1] : vector<16x32xf32> to vector<16xf32>
    %296 = vector.shape_cast %295 : vector<16xf32> to vector<16x1xf32>
    %cst_105 = arith.constant 3.200000e+01 : f32
    %297 = vector.broadcast %cst_105 : f32 to vector<16x1xf32>
    %298 = arith.divf %296, %297 : vector<16x1xf32>
    %299 = vector.broadcast %298 : vector<16x1xf32> to vector<16x32xf32>
    %300 = arith.subf %294, %299 : vector<16x32xf32>
    %301 = arith.mulf %300, %300 : vector<16x32xf32>
    %cst_106 = arith.constant dense<0.000000e+00> : vector<16xf32>
    %302 = vector.multi_reduction <add>, %301, %cst_106 [1] : vector<16x32xf32> to vector<16xf32>
    %303 = vector.shape_cast %302 : vector<16xf32> to vector<16x1xf32>
    %cst_107 = arith.constant 3.200000e+01 : f32
    %304 = vector.broadcast %cst_107 : f32 to vector<16x1xf32>
    %305 = arith.divf %303, %304 : vector<16x1xf32>
    %306 = vector.broadcast %298 : vector<16x1xf32> to vector<16x32xf32>
    %307 = arith.subf %294, %306 : vector<16x32xf32>
    %cst_108 = arith.constant 9.99999974E-6 : f32
    %308 = vector.broadcast %cst_108 : f32 to vector<16x1xf32>
    %309 = arith.addf %305, %308 : vector<16x1xf32>
    %310 = math.rsqrt %309 : vector<16x1xf32>
    %311 = vector.broadcast %310 : vector<16x1xf32> to vector<16x32xf32>
    %312 = arith.mulf %307, %311 : vector<16x32xf32>
    %313 = vector.broadcast %169 : vector<1x32xf32> to vector<16x32xf32>
    %314 = arith.mulf %312, %313 : vector<16x32xf32>
    %315 = vector.broadcast %170 : vector<1x32xf32> to vector<16x32xf32>
    %316 = arith.addf %314, %315 : vector<16x32xf32>
    %317 = vector.extract_strided_slice %316 {offsets = [0, 0], sizes = [1, 32], strides = [1, 1]} : vector<16x32xf32> to vector<1x32xf32>
    %318 = vector.extract_strided_slice %316 {offsets = [8, 0], sizes = [1, 32], strides = [1, 1]} : vector<16x32xf32> to vector<1x32xf32>
    %319 = tpu.concatenate %317, %318 in 0 : vector<1x32xf32>, vector<1x32xf32> -> vector<2x32xf32>
    %320 = arith.truncf %319 : vector<2x32xf32> to vector<2x32xbf16>
    %c0_109 = arith.constant 0 : index
    %c0_110 = arith.constant 0 : index
    %321 = vector.load %arg11[%c0_109, %c0_110] : memref<32x2xbf16, #tpu.memory_space<vmem>>, vector<32x2xbf16>
    %cst_111 = arith.constant dense<0.000000e+00> : vector<2x2xf32>
    %322 = tpu.matmul %320, %321, %cst_111 {dimension_numbers = #tpu.dot_dimension_numbers<[1], [0], [0], [1], [0, 0, 1, 1], [], []>} : vector<2x32xbf16>, vector<32x2xbf16>, vector<2x2xf32> -> vector<2x2xf32>
    %c0_112 = arith.constant 0 : index
    %c0_113 = arith.constant 0 : index
    %323 = vector.load %arg12[%c0_112, %c0_113] : memref<1x2xf32, #tpu.memory_space<vmem>>, vector<1x2xf32>
    %324 = vector.broadcast %323 : vector<1x2xf32> to vector<2x2xf32>
    %325 = arith.addf %322, %324 : vector<2x2xf32>
    %cst_114 = arith.constant dense<0xFF800000> : vector<2xf32>
    %326 = vector.multi_reduction <maximumf>, %325, %cst_114 [1] : vector<2x2xf32> to vector<2xf32>
    %327 = vector.shape_cast %326 : vector<2xf32> to vector<2x1xf32>
    %328 = vector.broadcast %327 : vector<2x1xf32> to vector<2x2xf32>
    %329 = arith.subf %325, %328 : vector<2x2xf32>
    %330 = math.exp %329 : vector<2x2xf32>
    %cst_115 = arith.constant dense<0.000000e+00> : vector<2xf32>
    %331 = vector.multi_reduction <add>, %330, %cst_115 [1] : vector<2x2xf32> to vector<2xf32>
    %332 = vector.shape_cast %331 : vector<2xf32> to vector<2x1xf32>
    %333 = math.log %332 : vector<2x1xf32>
    %334 = arith.addf %333, %327 : vector<2x1xf32>
    %c0_116 = arith.constant 0 : index
    %c0_117 = arith.constant 0 : index
    %335 = vector.load %arg2[%c0_116, %c0_117] : memref<2x2xf32, #tpu.memory_space<vmem>>, vector<2x2xf32>
    %336 = arith.mulf %335, %325 : vector<2x2xf32>
    %cst_118 = arith.constant dense<0.000000e+00> : vector<2xf32>
    %337 = vector.multi_reduction <add>, %336, %cst_118 [1] : vector<2x2xf32> to vector<2xf32>
    %338 = vector.shape_cast %337 : vector<2xf32> to vector<2x1xf32>
    %339 = arith.subf %334, %338 : vector<2x1xf32>
    %cst_119 = arith.constant dense<0.000000e+00> : vector<1xf32>
    %340 = vector.multi_reduction <add>, %339, %cst_119 [0] : vector<2x1xf32> to vector<1xf32>
    %341 = vector.shape_cast %340 : vector<1xf32> to vector<1x1xf32>
    %cst_120 = arith.constant 2.000000e+00 : f32
    %342 = vector.broadcast %cst_120 : f32 to vector<1x1xf32>
    %343 = arith.divf %341, %342 : vector<1x1xf32>
    %344 = tpu.iota {dimensions = array<i32: 1>} : vector<2x128xi32>
    %c0_i32 = arith.constant 0 : i32
    %345 = vector.broadcast %c0_i32 : i32 to vector<2x128xi32>
    %346 = arith.cmpi eq, %344, %345 : vector<2x128xi32>
    %347 = vector.extract_strided_slice %325 {offsets = [0, 0], sizes = [2, 1], strides = [1, 1]} : vector<2x2xf32> to vector<2x1xf32>
    %c1_i32 = arith.constant 1 : i32
    %348 = vector.broadcast %c1_i32 : i32 to vector<2x128xi32>
    %349 = arith.cmpi eq, %344, %348 : vector<2x128xi32>
    %350 = vector.extract_strided_slice %325 {offsets = [0, 1], sizes = [2, 1], strides = [1, 1]} : vector<2x2xf32> to vector<2x1xf32>
    %cst_121 = arith.constant 0.000000e+00 : f32
    %351 = vector.shape_cast %350 : vector<2x1xf32> to vector<2x1xf32>
    %352 = vector.broadcast %351 : vector<2x1xf32> to vector<2x128xf32>
    %353 = vector.broadcast %cst_121 : f32 to vector<2x128xf32>
    %354 = arith.select %349, %352, %353 : vector<2x128xi1>, vector<2x128xf32>
    %355 = vector.shape_cast %347 : vector<2x1xf32> to vector<2x1xf32>
    %356 = vector.broadcast %355 : vector<2x1xf32> to vector<2x128xf32>
    %357 = arith.select %346, %356, %354 : vector<2x128xi1>, vector<2x128xf32>
    %358 = vector.shape_cast %343 : vector<1x1xf32> to vector<1x1xf32>
    %359 = vector.broadcast %358 : vector<1x1xf32> to vector<1x128xf32>
    %cst_122 = arith.constant 0.000000e+00 : f32
    %360 = vector.broadcast %cst_122 : f32 to vector<5x128xf32>
    %361 = tpu.concatenate %357, %359, %360 in 0 : vector<2x128xf32>, vector<1x128xf32>, vector<5x128xf32> -> vector<8x128xf32>
    %c0_123 = arith.constant 0 : index
    %c0_124 = arith.constant 0 : index
    %362 = vector.load %arg13[%c0_123, %c0_124] : memref<8x128xf32, #tpu.memory_space<vmem>>, vector<8x128xf32>
    tpu.vector_store %arg13[%c0_123, %c0_124], %361 {strides = array<i32>} : memref<8x128xf32, #tpu.memory_space<vmem>>, vector<8x128xf32>,
    return
  }
}

</mosaic_0001>

<bundles_post_ra>
// kernel: model_forward.1
= control target key start
LH: loop header
LB: loop body
LE: loop exit
PB: predicated region body
PF: predicated region fallthrough
CT: control target
= control target key end

     0   :  { %v2625_v0 = vmov 0.0   ;;  %vm2626_vm0 = vmmov 0   ;;  %vm94_vm1 = vcmask 261120   ;;  %v60_v10 = vlaneseq  ;;  %s2627_s25 = smov 112   ;;  %s2629_s14 = smov 16   ;;  %s3163_s4 = inlined_call_operand.vmem [shape: bf16[2,32,32], index: 4, kind: input, shape index: {}]   ;;  %s3164_s3 = inlined_call_operand.vmem [shape: bf16[2,32,32], index: 3, kind: input, shape index: {}]   ;;  %s3165_s0 = inlined_call_operand.vmem [shape: f32[16,32], index: 0, kind: input, shape index: {}]   ;;  %s3166_s5 = inlined_call_operand.vmem [shape: bf16[2,32,32], index: 5, kind: input, shape index: {}]   ;;  %s3167_s10 = inlined_call_operand.vmem [shape: f32[2,9,32], index: 10, kind: input, shape index: {}]   ;;  %s3168_s1 = inlined_call_operand.vmem [shape: f32[2,8], index: 1, kind: input, shape index: {}]   ;;  %s3169_s6 = inlined_call_operand.vmem [shape: bf16[2,32,32], index: 6, kind: input, shape index: {}]   ;;  %s3170_s7 = inlined_call_operand.vmem [shape: bf16[2,32,64], index: 7, kind: input, shape index: {}]   ;;  %s3171_s9 = inlined_call_operand.vmem [shape: bf16[2,64,32], index: 9, kind: input, shape index: {}]   ;;  %s3172_s8 = inlined_call_operand.vmem [shape: f32[2,1,64], index: 8, kind: input, shape index: {}]   ;;  %s3173_s11 = inlined_call_operand.vmem [shape: bf16[32,2], index: 11, kind: input, shape index: {}]   ;;  %s3174_s12 = inlined_call_operand.vmem [shape: f32[1,2], index: 12, kind: input, shape index: {}]   ;;  %s3175_s2 = inlined_call_operand.vmem [shape: f32[2,2], index: 2, kind: input, shape index: {}]   ;;  %s3176_s13 = inlined_call_operand.vmem [shape: f32[8,128], index: 13, kind: output, shape index: {}]  }
   0x1   :  { %2316 = vmatprep.subr.bf16.mxu1 %v2625_v0  ;;  %v2535_v1 = vld [vmem:[%s3163_s4] sm:$0xff]   ;;  %2308 = vmatprep.subr.bf16.mxu0 %v2625_v0  ;;  %v2536_v2 = vld [vmem:[%s3163_s4 + $0x8] sm:$0xff]   ;;  %vm265_vm2 = vcmask 130048   ;;  %vm402_vm3 = vcmask 1043456   ;;  %v2628_v47 = vmov 1966171168  }
   0x2   :  { %2320 = vmatprep.mubr.msk.bf16.mxu1 %vm2626_vm0, %v2625_v0  ;;  %2312 = vmatprep.mubr.msk.bf16.mxu0 %vm2626_vm0, %v2625_v0  ;;  %v2537_v3 = vld [vmem:[%s3164_s3] sm:$0xff]   ;;  %v2726_v5 = vld [vmem:[%s3165_s0 + $0x8] sm:$0xff]  ;;  %v2754_v11 = vshrl.u32 %v60_v10, 7  ;;  %v58_v48 = vunpack.c.l.s4 %v2628_v47  ;;  %vm372_vm4 = vcmask 64512   ;;  %vm961_vm5 = vcmask 523264  }
   0x3   :  { %2317 = vmatpush3.bf16.msra.mxu1 %v2535_v1  ;;  %v2721_v4 = vld [vmem:[%s3165_s0] sm:$0xff]  ;;  %2309 = vmatpush3.bf16.msra.mxu0 %v2537_v3  ;;  %v2538_v6 = vld [vmem:[%s3164_s3 + $0x8] sm:$0xff]   ;;  %vm2016_vm6 = vcmask 1040384   ;;  %vm2085_vm7 = vcmask 9216   ;;  %vm2104_vm8 = vcmask 1041408   ;;  %vm2130_vm11 = vcmask 1042432  }
   0x4   :  { %2318 = vmatprep.subr.bf16.mxu1 %v2625_v0  ;;  %v73_v7 = vpack.c.bf16 %v2726_v5, %v2721_v4  ;;  %2310 = vmatprep.subr.bf16.mxu0 %v2625_v0  ;;  %v2539_v8 = vld [vmem:[%s3166_s5] sm:$0xff]   ;;  %v2540_v9 = vld [vmem:[%s3166_s5 + $0x8] sm:$0xff]   ;;  %v145_v12 = vsub.s32 1, %v2754_v11  ;;  %v2766_v15 = vsub.s32 0, %v2754_v11  ;;  %v206_v26 = vsub.s32 2, %v2754_v11 }
   0x5   :  { %v2760_v13 = vld [vmem:[%s3167_s10] sm:$0xff]  ;;  %v59_v49 = vunpack.c.0.s8 %v58_v48 }
   0x6   :  { %v146_v14 = vrot.slane %v2760_v13, %v145_v12  ;;  %v81_v19 = vrot.slane %v2760_v13, %v2766_v15  ;;  %v207_v33 = vrot.slane %v2760_v13, %v206_v26  ;;  %v2137_v50 = vld.sshfl [vmem:[%s3168_s1] sm:$0x11 pattern:$0x75316420] }
   0x7   :  { %2319 = vmatpush3.bf16.msra.mxu1 %v2536_v2  ;;  %2311 = vmatpush3.bf16.msra.mxu0 %v2538_v6  ;;  %v62_v51 = vsub.s32 %v59_v49, %v2754_v11  ;;  %v56_v52 = vcombine.high %v2137_v50, %v2137_v50 }
   0x8   :  { %2332 = vmatprep.subr.bf16.mxu1 %v2625_v0  ;;  %2324 = vmatprep.subr.bf16.mxu0 %v2625_v0 }
   0x9   :  { %v63_v53 = vrot.slane %v2137_v50, %v62_v51  ;;  %v70_v54 = vrot.slane %v56_v52, %v62_v51 }
   0xa   :  { %2321 = vmatmul.mubr.msk.bf16.vlgmr.msra.gmra.mrb[0].mxu1 %vm94_vm1, %v73_v7  ;;  %2313 = vmatmul.mubr.msk.bf16.vlgmr.msra.gmra.mrb[0].mxu0 %vm94_vm1, %v73_v7 }
   0xb   :  { %2334 = vmatprep.mubr.msk.bf16.mxu1 %vm2626_vm0, %v2625_v0  ;;  %2325 = vmatpush3.bf16.msra.mxu0 %v2539_v8  ;;  %v2806_v55 = vrot.slane %v63_v53, %v2766_v15  ;;  %v2809_v59 = vrot.slane %v70_v54, %v2766_v15 }
   0xc   :  { %2328 = vmatprep.mubr.msk.bf16.mxu0 %vm2626_vm0, %v2625_v0  ;;  %2326 = vmatprep.subr.bf16.mxu0 %v2625_v0 }
   0xf   :  { %2327 = vmatpush3.bf16.msra.mxu0 %v2540_v9 }
  0x10   :  { %2338 = vmatprep.subr.bf16.mxu0 %v2625_v0 }
  0x12   :  { %2329 = vmatmul.mubr.msk.bf16.vlgmr.msra.gmra.mrb[4].mxu0 %vm94_vm1, %v73_v7 }
  0x13   :  { %2340 = vmatprep.mubr.msk.bf16.mxu0 %vm2626_vm0, %v2625_v0 }
  0xdd   :  { %v193_v16 = vpop.f32.mrb[0].mxu1  ;;  %v132_v21 = vpop.f32.mrb[0].mxu0 }
  0xde   :  { %v194_v17 = vadd.f32 %v193_v16, %v146_v14  ;;  %v2322_v18 = vpop.f32.mrb[1].mxu1  ;;  %v2314_v25 = vpop.f32.mrb[1].mxu0  ;;  %v133_v30 = vadd.f32 %v132_v21, %v81_v19 }
  0xdf   :  { %v196_v20 = vpop.f32.mrb[2].mxu1  ;;  %v135_v27 = vpop.f32.mrb[2].mxu0 }
  0xe0   :  { %v2770_v22 = vpack.c.bf16 %v194_v17, %v194_v17  ;;  %v197_v23 = vadd.f32 %v196_v20, %v146_v14  ;;  %v2323_v24 = vpop.f32.mrb[3].mxu1  ;;  %v2315_v31 = vpop.f32.mrb[3].mxu0  ;;  %v2781_v34 = vpack.c.bf16 %v133_v30, %v133_v30  ;;  %v136_v35 = vadd.f32 %v135_v27, %v81_v19 }
  0xe2   :  { %v270_v28 = vsel %vm265_vm2, %v2770_v22, 0  ;;  %v264_v29 = vpack.c.bf16 %v197_v23, %v197_v23  ;;  %v262_v40 = vpack.c.bf16 %v136_v35, %v136_v35 }
  0xe3   :  { %2333 = vmatpush3.bf16.xpose.msra.mxu1 %v270_v28 }
  0xe4   :  { %v316_v32 = vsel %vm265_vm2, %v264_v29, 0  ;;  %548 = vrot.lane.b32.xlu1 %v264_v29, %s2627_s25  ;;  %2344 = vmatprep.subr.bf16.mxu1 %v2625_v0 }
  0xe5   :  { %2339 = vmatpush3.bf16.xpose.msra.mxu0 %v316_v32  ;;  %v254_v36 = vpop.f32.mrb[4].mxu0 }
  0xe6   :  { %2350 = vmatprep.subr.bf16.mxu0 %v2625_v0  ;;  %v255_v37 = vadd.f32 %v254_v36, %v207_v33  ;;  %v2330_v38 = vpop.f32.mrb[5].mxu0 }
  0xe7   :  { %v257_v39 = vpop.f32.mrb[6].mxu0 }
  0xe8   :  { %v2786_v41 = vpack.c.bf16 %v255_v37, %v255_v37  ;;  %v258_v42 = vadd.f32 %v257_v39, %v207_v33  ;;  %v2331_v43 = vpop.f32.mrb[7].mxu0 }
  0xea   :  { %2335 = vmatmul.mubr.msk.bf16.vlgmr.msra.gmra.mrb[4].mxu1 %vm265_vm2, %v2781_v34  ;;  %v404_v44 = vsel %vm402_vm3, %v2786_v41, 0  ;;  %v2793_v45 = vpack.c.bf16 %v258_v42, %v258_v42 }
  0xeb   :  { %2346 = vmatprep.mubr.msk.bf16.mxu1 %vm2626_vm0, %v2625_v0  ;;  %2345 = vmatpush3.bf16.msra.mxu1 %v404_v44 }
  0xec   :  { %2341 = vmatmul.mubr.msk.bf16.vlgmr.msra.gmra.mrb[8].mxu0 %vm265_vm2, %v262_v40  ;;  %v450_v46 = vsel %vm402_vm3, %v2793_v45, 0  ;;  %2356 = vmatprep.subr.bf16.mxu1 %v2625_v0 }
  0xed   :  { %2352 = vmatprep.mubr.msk.bf16.mxu0 %vm2626_vm0, %v2625_v0  ;;  %2351 = vmatpush3.bf16.msra.mxu0 %v450_v46 }
  0xee   :  { %2362 = vmatprep.subr.bf16.mxu0 %v2625_v0 }
 0x1bd   :  { %v306_v56 = vpop.f32.mrb[4].mxu1 }
 0x1be   :  { %v358_v57 = vmul.f32 0.25, %v306_v56  ;;  %v2336_v58 = vpop.f32.mrb[5].mxu1 }
 0x1bf   :  { %v309_v60 = vpop.f32.mrb[6].mxu1  ;;  %v352_v61 = vpop.f32.mrb[8].mxu0 }
 0x1c0   :  { %v359_v62 = vmul.f32 0.25, %v352_v61  ;;  %v2337_v63 = vpop.f32.mrb[7].mxu1  ;;  %v2342_v1 = vpop.f32.mrb[9].mxu0  ;;  %v370_v2 = vadd.f32 %v2806_v55, %v358_v57 }
 0x1c1   :  { %v355_v3 = vpop.f32.mrb[10].mxu0 }
 0x1c2   :  { %v2343_v6 = vpop.f32.mrb[11].mxu0  ;;  %v373_v7 = vsel %vm372_vm4, %v370_v2, -inf  ;;  %v371_v8 = vadd.f32 %v2809_v59, %v359_v62 }
 0x1c3   :  { %374 = vmax.xlane.f32.xlu0 %v373_v7 }
 0x1c4   :  { %v376_v9 = vsel %vm372_vm4, %v371_v8, -inf }
 0x1c7   :  { %377 = vmax.xlane.f32.xlu0 %v376_v9 }
 0x1dd   :  { %496 = vrot.lane.b32.xlu0 %v2770_v22, %s2627_s25  ;;  %v549_v22 = vpop.permute.xlu1 %548 }
 0x1de   :  { %v554_v37 = vsel %vm265_vm2, %v549_v22, 0 }
 0x250   :  { %v375_v14 = vpop.xlane.xlu0 %374 }
 0x251   :  { %v379_v16 = vsub.f32 %v370_v2, %v375_v14 }
 0x253   :  { %v381_v17 = vmul.f32 1.442695, %v379_v16 }
 0x254   :  { %v378_v18 = vpop.xlane.xlu0 %377 }
 0x255   :  { %2565 = vpow2.f32 %v381_v17  ;;  %v380_v19 = vsub.f32 %v371_v8, %v378_v18 }
 0x257   :  { %v383_v20 = vmul.f32 1.442695, %v380_v19 }
 0x258   :  { %v497_v31 = vpop.permute.xlu0 %496 }
 0x259   :  { %2567 = vpow2.f32 %v383_v20  ;;  %v502_v35 = vsel %vm265_vm2, %v497_v31, 0  ;;  %v2541_v31 = vld [vmem:[%s3169_s6] sm:$0xff]  }
 0x25f   :  { %v2566_v21 = vpop.eup %2565 }
 0x260   :  { %v385_v23 = vsel %vm372_vm4, %v2566_v21, 0.0 }
 0x261   :  { %386 = vadd.xlane.f32.xlu1 %v385_v23 }
 0x263   :  { %v2568_v24 = vpop.eup %2567 }
 0x264   :  { %v388_v25 = vsel %vm372_vm4, %v2568_v24, 0.0 }
 0x265   :  { %389 = vadd.xlane.f32.xlu1 %v388_v25 }
 0x276   :  { %493 = vrot.lane.b32.xlu1 %v2781_v34, %s2627_s25 }
 0x27a   :  { %545 = vrot.lane.b32.xlu1 %v262_v40, %s2627_s25 }
 0x2ee   :  { %v387_v27 = vpop.xlane.xlu1 %386 }
 0x2ef   :  { %2569 = vrcp.f32 %v387_v27 }
 0x2f2   :  { %v390_v28 = vpop.xlane.xlu1 %389 }
 0x2f3   :  { %2571 = vrcp.f32 %v390_v28 }
 0x2f6   :  { %v494_v38 = vpop.permute.xlu1 %493 }
 0x2f9   :  { %v2570_v29 = vpop.eup %2569 }
 0x2fa   :  { %v393_v30 = vmul.f32 %v2570_v29, %v2566_v21  ;;  %v546_v39 = vpop.permute.xlu1 %545 }
 0x2fc   :  { %v395_v32 = vpack.c.bf16 %v393_v30, %v393_v30 }
 0x2fd   :  { %v2572_v33 = vpop.eup %2571 }
 0x2fe   :  { %v394_v36 = vmul.f32 %v2572_v33, %v2568_v24  ;;  %2347 = vmatmul.mubr.msk.bf16.vlgmr.msra.gmra.mrb[8].mxu1 %vm372_vm4, %v395_v32  ;;  %v2542_v32 = vld [vmem:[%s3169_s6 + $0x8] sm:$0xff]  }
 0x2ff   :  { %2357 = vmatpush3.bf16.xpose.msra.mxu1 %v502_v35  ;;  %2358 = vmatprep.mubr.msk.bf16.mxu1 %vm2626_vm0, %v2625_v0 }
 0x300   :  { %v396_v34 = vpack.c.bf16 %v394_v36, %v394_v36  ;;  %2368 = vmatprep.subr.bf16.mxu1 %v2625_v0 }
 0x302   :  { %2353 = vmatmul.mubr.msk.bf16.vlgmr.msra.gmra.mrb[12].mxu0 %vm372_vm4, %v396_v34 }
 0x303   :  { %2363 = vmatpush3.bf16.xpose.msra.mxu0 %v554_v37  ;;  %2364 = vmatprep.mubr.msk.bf16.mxu0 %vm2626_vm0, %v2625_v0 }
 0x304   :  { %2374 = vmatprep.subr.bf16.mxu0 %v2625_v0 }
 0x306   :  { %2359 = vmatmul.mubr.msk.bf16.vlgmr.msra.gmra.mrb[12].mxu1 %vm265_vm2, %v494_v38 }
 0x307   :  { %2370 = vmatprep.mubr.msk.bf16.mxu1 %vm2626_vm0, %v2625_v0 }
 0x30a   :  { %2365 = vmatmul.mubr.msk.bf16.vlgmr.msra.gmra.mrb[16].mxu0 %vm265_vm2, %v546_v39 }
 0x30b   :  { %2376 = vmatprep.mubr.msk.bf16.mxu0 %vm2626_vm0, %v2625_v0 }
 0x3d1   :  { %v2838_v40 = vpop.f32.mrb[8].mxu1 }
 0x3d2   :  { %v2348_v42 = vpop.f32.mrb[9].mxu1 }
 0x3d3   :  { %v443_v43 = vpop.f32.mrb[10].mxu1 }
 0x3d4   :  { %v2349_v44 = vpop.f32.mrb[11].mxu1 }
 0x3d5   :  { %v2840_v46 = vpop.f32.mrb[12].mxu0 }
 0x3d6   :  { %v2354_v47 = vpop.f32.mrb[13].mxu0 }
 0x3d7   :  { %v489_v48 = vpop.f32.mrb[14].mxu0 }
 0x3d8   :  { %v2355_v49 = vpop.f32.mrb[15].mxu0 }
 0x3d9   :  { %v538_v50 = vpop.f32.mrb[12].mxu1 }
 0x3da   :  { %v596_v51 = vmul.f32 0.25, %v538_v50  ;;  %v2360_v52 = vpop.f32.mrb[13].mxu1 }
 0x3db   :  { %v541_v53 = vpop.f32.mrb[14].mxu1  ;;  %v739_v52 = vsub.s32 3, %v2754_v11 }
 0x3dc   :  { %v2361_v54 = vpop.f32.mrb[15].mxu1  ;;  %v598_v56 = vadd.f32 %v596_v51, %v2806_v55 }
 0x3dd   :  { %v590_v57 = vpop.f32.mrb[16].mxu0  ;;  %v740_v53 = vrot.slane %v2760_v13, %v739_v52 }
 0x3de   :  { %v597_v58 = vmul.f32 0.25, %v590_v57  ;;  %v2366_v60 = vpop.f32.mrb[17].mxu0  ;;  %v600_v61 = vsel %vm372_vm4, %v598_v56, -inf }
 0x3df   :  { %601 = vmax.xlane.f32.xlu0 %v600_v61  ;;  %v593_v62 = vpop.f32.mrb[18].mxu0 }
 0x3e0   :  { %v2367_v63 = vpop.f32.mrb[19].mxu0  ;;  %v599_v1 = vadd.f32 %v597_v58, %v2809_v59 }
 0x3e2   :  { %v603_v2 = vsel %vm372_vm4, %v599_v1, -inf }
 0x3e3   :  { %604 = vmax.xlane.f32.xlu1 %v603_v2 }
 0x3f4   :  { %674 = vrot.lane.b32.xlu1 %v2793_v45, %s2627_s25 }
 0x46c   :  { %v602_v3 = vpop.xlane.xlu0 %601 }
 0x46d   :  { %v606_v6 = vsub.f32 %v598_v56, %v602_v3 }
 0x46f   :  { %v608_v7 = vmul.f32 1.442695, %v606_v6 }
 0x470   :  { %v605_v8 = vpop.xlane.xlu1 %604 }
 0x471   :  { %2573 = vpow2.f32 %v608_v7  ;;  %v607_v9 = vsub.f32 %v599_v1, %v605_v8 }
 0x473   :  { %v610_v14 = vmul.f32 1.442695, %v607_v9 }
 0x474   :  { %v675_v16 = vpop.permute.xlu1 %674 }
 0x475   :  { %2575 = vpow2.f32 %v610_v14  ;;  %v680_v17 = vsel %vm402_vm3, %v675_v16, 0 }
 0x476   :  { %2375 = vmatpush3.bf16.msra.mxu0 %v680_v17  ;;  %v2544_v17 = vld [vmem:[%s3170_s7 + $0x8] sm:$0xff]  }
 0x477   :  { %2388 = vmatprep.subr.bf16.mxu0 %v2625_v0 }
 0x47b   :  { %v2574_v18 = vpop.eup %2573 }
 0x47c   :  { %v612_v19 = vsel %vm372_vm4, %v2574_v18, 0.0 }
 0x47d   :  { %613 = vadd.xlane.f32.xlu0 %v612_v19 }
 0x47f   :  { %v2576_v20 = vpop.eup %2575 }
 0x480   :  { %v615_v45 = vsel %vm372_vm4, %v2576_v20, 0.0 }
 0x481   :  { %616 = vadd.xlane.f32.xlu0 %v615_v45 }
 0x497   :  { %625 = vrot.lane.b32.xlu0 %v2786_v41, %s2627_s25 }
 0x50a   :  { %v614_v21 = vpop.xlane.xlu0 %613 }
 0x50b   :  { %2577 = vrcp.f32 %v614_v21 }
 0x50e   :  { %v617_v23 = vpop.xlane.xlu0 %616 }
 0x50f   :  { %2579 = vrcp.f32 %v617_v23 }
 0x512   :  { %v626_v24 = vpop.permute.xlu0 %625 }
 0x513   :  { %v631_v25 = vsel %vm402_vm3, %v626_v24, 0  ;;  %v828_v24 = vsub.s32 4, %v2754_v11 }
 0x514   :  { %2369 = vmatpush3.bf16.msra.mxu1 %v631_v25 }
 0x515   :  { %v2578_v22 = vpop.eup %2577  ;;  %2380 = vmatprep.subr.bf16.mxu1 %v2625_v0 }
 0x516   :  { %v620_v27 = vmul.f32 %v2578_v22, %v2574_v18  ;;  %v829_v22 = vrot.slane %v2760_v13, %v828_v24 }
 0x518   :  { %v622_v28 = vpack.c.bf16 %v620_v27, %v620_v27 }
 0x519   :  { %v2580_v29 = vpop.eup %2579 }
 0x51a   :  { %v621_v30 = vmul.f32 %v2580_v29, %v2576_v20  ;;  %2371 = vmatmul.mubr.msk.bf16.vlgmr.msra.gmra.mrb[16].mxu1 %vm372_vm4, %v622_v28  ;;  %v834_v28 = vsub.s32 5, %v2754_v11 }
 0x51b   :  { %2384 = vmatprep.mubr.msk.bf16.mxu1 %vm2626_vm0, %v2625_v0  ;;  %2381 = vmatpush3.bf16.msra.mxu1 %v2541_v31 }
 0x51c   :  { %v623_v41 = vpack.c.bf16 %v621_v30, %v621_v30  ;;  %2382 = vmatprep.subr.bf16.mxu1 %v2625_v0  ;;  %v835_v31 = vrot.slane %v2760_v13, %v834_v28 }
 0x51e   :  { %2377 = vmatmul.mubr.msk.bf16.vlgmr.msra.gmra.mrb[20].mxu0 %vm372_vm4, %v623_v41 }
 0x51f   :  { %2392 = vmatprep.mubr.msk.bf16.mxu0 %vm2626_vm0, %v2625_v0  ;;  %2383 = vmatpush3.bf16.msra.mxu1 %v2542_v32 }
 0x520   :  { %2396 = vmatprep.subr.bf16.mxu1 %v2625_v0 }
 0x5ed   :  { %v667_v33 = vpop.f32.mrb[16].mxu1 }
 0x5ee   :  { %v2372_v35 = vpop.f32.mrb[17].mxu1 }
 0x5ef   :  { %v670_v36 = vpop.f32.mrb[18].mxu1 }
 0x5f0   :  { %v2373_v34 = vpop.f32.mrb[19].mxu1 }
 0x5f1   :  { %v716_v37 = vpop.f32.mrb[20].mxu0  ;;  %v2545_v34 = vld [vmem:[%s3171_s9] sm:$0xff]  }
 0x5f2   :  { %v2523_v38 = vpack.i.bf16 %v716_v37, %v667_v33  ;;  %v2378_v39 = vpop.f32.mrb[21].mxu0  ;;  %v2546_v37 = vld [vmem:[%s3171_s9 + $0x8] sm:$0xff]  }
 0x5f3   :  { %v719_v42 = vpop.f32.mrb[22].mxu0  ;;  %v2548_v39 = vld [vmem:[%s3171_s9 + $0x18] sm:$0xff]  }
 0x5f4   :  { %2524 = vrot.lane.b32.xlu1 %v2523_v38, %s2629_s14  ;;  %v2379_v43 = vpop.f32.mrb[23].mxu0  ;;  %v2547_v38 = vld [vmem:[%s3171_s9 + $0x10] sm:$0xff]   ;;  %v2158_v42 = vld [vmem:[%s3172_s8] ss:$0 sm:$0xff] }
 0x666   :  { %v2525_v44 = vpop.permute.xlu1 %2524 }
 0x667   :  { %v2527_v47 = vunpack.i.h.bf16 %v2525_v44  ;;  %v2526_v48 = vunpack.i.l.bf16 %v2525_v44 }
 0x669   :  { %v731_v49 = vsel %vm265_vm2, %v2840_v46, %v2527_v47  ;;  %v730_v50 = vsel %vm265_vm2, %v2838_v40, %v2526_v48 }
 0x66a   :  { %v732_v51 = vpack.c.bf16 %v731_v49, %v730_v50 }
 0x66c   :  { %2385 = vmatmul.mubr.msk.bf16.vlgmr.msra.gmra.mrb[20].mxu1 %vm94_vm1, %v732_v51 }
 0x66d   :  { %2404 = vmatprep.mubr.msk.bf16.mxu1 %vm2626_vm0, %v2625_v0  ;;  %2397 = vmatpush3.bf16.msra.mxu1 %v2545_v34 }
 0x66e   :  { %2398 = vmatprep.subr.bf16.mxu1 %v2625_v0 }
 0x671   :  { %2399 = vmatpush3.bf16.msra.mxu1 %v2546_v37  ;;  %v2550_v37 = vld [vmem:[%s3166_s5 + $0x10] sm:$0xff]  }
 0x672   :  { %2400 = vmatprep.subr.bf16.mxu1 %v2625_v0 }
 0x675   :  { %2401 = vmatpush3.bf16.msra.mxu1 %v2547_v38  ;;  %v2551_v38 = vld [vmem:[%s3164_s3 + $0x18] sm:$0xff]  }
 0x676   :  { %2402 = vmatprep.subr.bf16.mxu1 %v2625_v0 }
 0x679   :  { %2403 = vmatpush3.bf16.msra.mxu1 %v2548_v39  ;;  %v2552_v39 = vld [vmem:[%s3166_s5 + $0x18] sm:$0xff]  }
 0x67a   :  { %2424 = vmatprep.subr.bf16.mxu1 %v2625_v0 }
 0x73f   :  { %v790_v54 = vpop.f32.mrb[20].mxu1 }
 0x740   :  { %v791_v56 = vadd.f32 %v790_v54, %v740_v53  ;;  %v2386_v57 = vpop.f32.mrb[21].mxu1 }
 0x741   :  { %v793_v58 = vpop.f32.mrb[22].mxu1 }
 0x742   :  { %v794_v46 = vadd.f32 %v793_v58, %v740_v53  ;;  %v2387_v60 = vpop.f32.mrb[23].mxu1  ;;  %v797_v40 = vadd.f32 %v791_v56, %v2721_v4 }
 0x744   :  { %v799_v61 = vsel %vm94_vm1, %v797_v40, 0.0  ;;  %v798_v62 = vadd.f32 %v794_v46, %v2726_v5  ;;  %v2543_v5 = vld [vmem:[%s3170_s7] sm:$0xff]  }
 0x745   :  { %800 = vadd.xlane.f32.xlu1 %v799_v61  ;;  %2389 = vmatpush3.bf16.msra.mxu0 %v2543_v5 }
 0x746   :  { %v802_v63 = vsel %vm94_vm1, %v798_v62, 0.0  ;;  %2390 = vmatprep.subr.bf16.mxu0 %v2625_v0 }
 0x747   :  { %803 = vadd.xlane.f32.xlu0 %v802_v63 }
 0x749   :  { %2391 = vmatpush3.bf16.msra.mxu0 %v2544_v17 }
 0x74a   :  { %2408 = vmatprep.subr.bf16.mxu0 %v2625_v0 }
 0x7d2   :  { %v801_v1 = vpop.xlane.xlu1 %800 }
 0x7d3   :  { %v806_v2 = vmul.f32 0.03125, %v801_v1 }
 0x7d4   :  { %v804_v3 = vpop.xlane.xlu0 %803 }
 0x7d5   :  { %v808_v6 = vsub.f32 %v797_v40, %v806_v2  ;;  %v807_v7 = vmul.f32 0.03125, %v804_v3 }
 0x7d7   :  { %v809_v8 = vsub.f32 %v798_v62, %v807_v7  ;;  %v810_v9 = vmul.f32 %v808_v6, %v808_v6 }
 0x7d9   :  { %v812_v14 = vsel %vm94_vm1, %v810_v9, 0.0  ;;  %v811_v16 = vmul.f32 %v809_v8, %v809_v8 }
 0x7da   :  { %813 = vadd.xlane.f32.xlu0 %v812_v14  ;;  %v935_v14 = vsub.s32 6, %v2754_v11 }
 0x7db   :  { %v815_v4 = vsel %vm94_vm1, %v811_v16, 0.0 }
 0x7dc   :  { %v936_v16 = vrot.slane %v2760_v13, %v935_v14 }
 0x7de   :  { %816 = vadd.xlane.f32.xlu0 %v815_v4 }
 0x867   :  { %v814_v18 = vpop.xlane.xlu0 %813 }
 0x868   :  { %v818_v19 = vmul.f32 0.03125, %v814_v18 }
 0x86a   :  { %v820_v20 = vadd.f32 1e-05, %v818_v19 }
 0x86b   :  { %v817_v45 = vpop.xlane.xlu0 %816 }
 0x86c   :  { %2581 = vrsqrt.f32 %v820_v20  ;;  %v819_v21 = vmul.f32 0.03125, %v817_v45 }
 0x86e   :  { %v821_v23 = vadd.f32 1e-05, %v819_v21 }
 0x870   :  { %2583 = vrsqrt.f32 %v821_v23 }
 0x876   :  { %v2582_v25 = vpop.eup %2581 }
 0x877   :  { %v824_v27 = vmul.f32 %v2582_v25, %v808_v6 }
 0x879   :  { %v830_v30 = vmul.f32 %v829_v22, %v824_v27 }
 0x87a   :  { %v2584_v29 = vpop.eup %2583 }
 0x87b   :  { %v825_v41 = vmul.f32 %v2584_v29, %v809_v8  ;;  %v836_v33 = vadd.f32 %v835_v31, %v830_v30 }
 0x87d   :  { %v831_v32 = vmul.f32 %v829_v22, %v825_v41 }
 0x87f   :  { %v837_v35 = vadd.f32 %v835_v31, %v831_v32 }
 0x881   :  { %v838_v36 = vpack.c.bf16 %v837_v35, %v836_v33 }
 0x883   :  { %2393 = vmatmul.mubr.msk.bf16.vlgmr.msra.gmra.mrb[24].mxu0 %vm94_vm1, %v838_v36 }
 0x884   :  { %2412 = vmatprep.mubr.msk.bf16.mxu0 %vm2626_vm0, %v2625_v0 }
 0x956   :  { %v899_v43 = vpop.f32.mrb[24].mxu0 }
 0x957   :  { %v900_v44 = vadd.f32 %v2158_v42, %v899_v43  ;;  %v2394_v47 = vpop.f32.mrb[25].mxu0 }
 0x958   :  { %v902_v48 = vpop.f32.mrb[26].mxu0 }
 0x959   :  { %v908_v49 = vmul.f32 0.044715, %v900_v44  ;;  %v903_v50 = vadd.f32 %v2158_v42, %v902_v48  ;;  %v2395_v51 = vpop.f32.mrb[27].mxu0  ;;  %v906_v2 = vmul.f32 0.5, %v900_v44 }
 0x95b   :  { %v910_v53 = vmul.f32 %v908_v49, %v900_v44  ;;  %v909_v54 = vmul.f32 0.044715, %v903_v50  ;;  %v907_v3 = vmul.f32 0.5, %v903_v50 }
 0x95d   :  { %v912_v56 = vmul.f32 %v910_v53, %v900_v44  ;;  %v911_v57 = vmul.f32 %v909_v54, %v903_v50 }
 0x95f   :  { %v914_v58 = vadd.f32 %v912_v56, %v900_v44  ;;  %v913_v46 = vmul.f32 %v911_v57, %v903_v50 }
 0x961   :  { %v916_v60 = vmul.f32 0.7978846, %v914_v58  ;;  %v915_v40 = vadd.f32 %v913_v46, %v903_v50  ;;  %v1036_v50 = vsub.s32 7, %v2754_v11  ;;  %v2167_v46 = vld [vmem:[%s3167_s10 + $0x8] ss:$0 sm:$0xff]  ;;  %v2630_v11 = vmov 0  }
 0x962   :  { %2534 = vset.pattern.permute.xlu0 %v2630_v11 }
 0x963   :  { %2585 = vtanh.f32 %v916_v60  ;;  %v917_v61 = vmul.f32 0.7978846, %v915_v40  ;;  %v1037_v51 = vrot.slane %v2760_v13, %v1036_v50 }
 0x965   :  { %2587 = vtanh.f32 %v917_v61 }
 0x96d   :  { %v2586_v62 = vpop.eup %2585 }
 0x96e   :  { %v920_v63 = vadd.f32 1.0, %v2586_v62  ;;  %v2553_v62 = vld [vmem:[%s3163_s4 + $0x10] sm:$0xff]  }
 0x96f   :  { %v2588_v1 = vpop.eup %2587 }
 0x970   :  { %v921_v6 = vadd.f32 1.0, %v2588_v1  ;;  %v922_v7 = vmul.f32 %v920_v63, %v906_v2  ;;  %v2554_v63 = vld [vmem:[%s3163_s4 + $0x18] sm:$0xff]  }
 0x972   :  { %v923_v8 = vmul.f32 %v921_v6, %v907_v3 }
 0x974   :  { %v924_v9 = vpack.c.bf16 %v923_v8, %v922_v7 }
 0x976   :  { %2405 = vmatmul.mubr.msk.bf16.vlgmr.msra.gmra.mrb[24].mxu1 %vm961_vm5, %v924_v9 }
 0x977   :  { %2428 = vmatprep.mubr.msk.bf16.mxu1 %vm2626_vm0, %v2625_v0  ;;  %2425 = vmatpush3.bf16.msra.mxu1 %v2550_v37 }
 0x978   :  { %2426 = vmatprep.subr.bf16.mxu1 %v2625_v0 }
 0x97b   :  { %2427 = vmatpush3.bf16.msra.mxu1 %v2552_v39 }
 0x97c   :  { %2438 = vmatprep.subr.bf16.mxu1 %v2625_v0 }
 0xa49   :  { %v999_v4 = vpop.f32.mrb[24].mxu1 }
 0xa4a   :  { %v1000_v5 = vadd.f32 %v999_v4, %v936_v16  ;;  %v2406_v17 = vpop.f32.mrb[25].mxu1  ;;  %v2986_v4 = vld [vmem:[%s3167_s10 + $0x10] sm:$0xff] }
 0xa4b   :  { %v1002_v18 = vpop.f32.mrb[26].mxu1 }
 0xa4c   :  { %v1003_v19 = vadd.f32 %v1002_v18, %v936_v16  ;;  %v2407_v20 = vpop.f32.mrb[27].mxu1  ;;  %v1006_v45 = vadd.f32 %v1000_v5, %v836_v33  ;;  %v1123_v5 = vrot.slane %v2986_v4, %v145_v12  ;;  %v1185_v18 = vrot.slane %v2986_v4, %v206_v26 }
 0xa4e   :  { %v1008_v21 = vsel %vm94_vm1, %v1006_v45, 0.0  ;;  %v1007_v23 = vadd.f32 %v1003_v19, %v837_v35  ;;  %v2549_v35 = vld [vmem:[%s3164_s3 + $0x10] sm:$0xff]  }
 0xa4f   :  { %1009 = vadd.xlane.f32.xlu1 %v1008_v21  ;;  %2409 = vmatpush3.bf16.msra.mxu0 %v2549_v35  ;;  %v1058_v21 = vrot.slane %v2986_v4, %v2766_v15 }
 0xa50   :  { %v1011_v25 = vsel %vm94_vm1, %v1007_v23, 0.0  ;;  %2410 = vmatprep.subr.bf16.mxu0 %v2625_v0 }
 0xa51   :  { %1012 = vadd.xlane.f32.xlu0 %v1011_v25 }
 0xa53   :  { %2411 = vmatpush3.bf16.msra.mxu0 %v2551_v38 }
 0xa54   :  { %2416 = vmatprep.subr.bf16.mxu0 %v2625_v0 }
 0xadc   :  { %v1010_v22 = vpop.xlane.xlu1 %1009 }
 0xadd   :  { %v1014_v27 = vmul.f32 0.03125, %v1010_v22 }
 0xade   :  { %v1013_v29 = vpop.xlane.xlu0 %1012 }
 0xadf   :  { %v1016_v30 = vsub.f32 %v1006_v45, %v1014_v27  ;;  %v1015_v41 = vmul.f32 0.03125, %v1013_v29 }
 0xae1   :  { %v1017_v31 = vsub.f32 %v1007_v23, %v1015_v41  ;;  %v1018_v32 = vmul.f32 %v1016_v30, %v1016_v30 }
 0xae3   :  { %v1020_v36 = vsel %vm94_vm1, %v1018_v32, 0.0  ;;  %v1019_v34 = vmul.f32 %v1017_v31, %v1017_v31 }
 0xae4   :  { %1021 = vadd.xlane.f32.xlu1 %v1020_v36 }
 0xae5   :  { %v1023_v33 = vsel %vm94_vm1, %v1019_v34, 0.0 }
 0xae6   :  { %1024 = vadd.xlane.f32.xlu0 %v1023_v33 }
 0xb71   :  { %v1022_v42 = vpop.xlane.xlu1 %1021 }
 0xb72   :  { %v1026_v43 = vmul.f32 0.03125, %v1022_v42 }
 0xb73   :  { %v1025_v44 = vpop.xlane.xlu0 %1024 }
 0xb74   :  { %v1028_v47 = vadd.f32 1e-05, %v1026_v43  ;;  %v1027_v48 = vmul.f32 0.03125, %v1025_v44 }
 0xb76   :  { %2589 = vrsqrt.f32 %v1028_v47  ;;  %v1029_v49 = vadd.f32 1e-05, %v1027_v48 }
 0xb78   :  { %2591 = vrsqrt.f32 %v1029_v49 }
 0xb80   :  { %v2590_v53 = vpop.eup %2589 }
 0xb81   :  { %v1032_v54 = vmul.f32 %v2590_v53, %v1016_v30 }
 0xb82   :  { %v2592_v56 = vpop.eup %2591 }
 0xb83   :  { %v1038_v57 = vmul.f32 %v1037_v51, %v1032_v54  ;;  %v1033_v58 = vmul.f32 %v2592_v56, %v1017_v31 }
 0xb85   :  { %v1039_v60 = vmul.f32 %v1037_v51, %v1033_v58  ;;  %v2960_v40 = vadd.f32 %v2167_v46, %v1038_v57 }
 0xb87   :  { %v2962_v61 = vadd.f32 %v2167_v46, %v1039_v60 }
 0xb89   :  { %v1049_v13 = vpack.c.bf16 %v2962_v61, %v2960_v40 }
 0xb8b   :  { %2413 = vmatmul.mubr.msk.bf16.vlgmr.msra.gmra.mrb[28].mxu0 %vm94_vm1, %v1049_v13  ;;  %2429 = vmatmul.mubr.msk.bf16.vlgmr.msra.gmra.mrb[28].mxu1 %vm94_vm1, %v1049_v13 }
 0xb8c   :  { %2417 = vmatpush3.bf16.msra.mxu0 %v2553_v62  ;;  %2420 = vmatprep.mubr.msk.bf16.mxu0 %vm2626_vm0, %v2625_v0 }
 0xb8d   :  { %2418 = vmatprep.subr.bf16.mxu0 %v2625_v0  ;;  %2440 = vmatprep.mubr.msk.bf16.mxu1 %vm2626_vm0, %v2625_v0 }
 0xb90   :  { %2419 = vmatpush3.bf16.msra.mxu0 %v2554_v63 }
 0xb91   :  { %2432 = vmatprep.subr.bf16.mxu0 %v2625_v0 }
 0xb93   :  { %2421 = vmatmul.mubr.msk.bf16.vlgmr.msra.gmra.mrb[32].mxu0 %vm94_vm1, %v1049_v13 }
 0xb94   :  { %2434 = vmatprep.mubr.msk.bf16.mxu0 %vm2626_vm0, %v2625_v0 }
 0xc5e   :  { %v1108_v1 = vpop.f32.mrb[28].mxu0  ;;  %v1232_v2 = vpop.f32.mrb[28].mxu1 }
 0xc5f   :  { %v2414_v3 = vpop.f32.mrb[29].mxu0  ;;  %v2430_v6 = vpop.f32.mrb[29].mxu1  ;;  %v1233_v27 = vadd.f32 %v1232_v2, %v1185_v18  ;;  %v1109_v12 = vadd.f32 %v1108_v1, %v1058_v21 }
 0xc60   :  { %v1111_v7 = vpop.f32.mrb[30].mxu0  ;;  %v1235_v8 = vpop.f32.mrb[30].mxu1 }
 0xc61   :  { %v2415_v9 = vpop.f32.mrb[31].mxu0  ;;  %v2431_v16 = vpop.f32.mrb[31].mxu1  ;;  %v1236_v41 = vadd.f32 %v1235_v8, %v1185_v18  ;;  %v2999_v26 = vpack.c.bf16 %v1233_v27, %v1233_v27  ;;  %v1112_v32 = vadd.f32 %v1111_v7, %v1058_v21  ;;  %v1239_v15 = vpack.c.bf16 %v1109_v12, %v1109_v12 }
 0xc63   :  { %v3002_v36 = vpack.c.bf16 %v1236_v41, %v1236_v41  ;;  %v1369_v34 = vsel %vm402_vm3, %v2999_v26, 0  ;;  %v1240_v33 = vpack.c.bf16 %v1112_v32, %v1112_v32 }
 0xc65   :  { %v1415_v35 = vsel %vm402_vm3, %v3002_v36, 0 }
 0xc66   :  { %v1170_v17 = vpop.f32.mrb[32].mxu0 }
 0xc67   :  { %v1171_v19 = vadd.f32 %v1170_v17, %v1123_v5  ;;  %v2422_v20 = vpop.f32.mrb[33].mxu0 }
 0xc68   :  { %v1173_v45 = vpop.f32.mrb[34].mxu0 }
 0xc69   :  { %v1241_v23 = vpack.c.bf16 %v1171_v19, %v1171_v19  ;;  %v1174_v25 = vadd.f32 %v1173_v45, %v1123_v5  ;;  %v2423_v22 = vpop.f32.mrb[35].mxu0 }
 0xc6b   :  { %v1247_v29 = vsel %vm265_vm2, %v1241_v23, 0  ;;  %v1242_v30 = vpack.c.bf16 %v1174_v25, %v1174_v25 }
 0xc6c   :  { %2433 = vmatpush3.bf16.xpose.msra.mxu0 %v1247_v29 }
 0xc6d   :  { %v1293_v31 = vsel %vm265_vm2, %v1242_v30, 0  ;;  %2444 = vmatprep.subr.bf16.mxu0 %v2625_v0 }
 0xc6e   :  { %2439 = vmatpush3.bf16.xpose.msra.mxu1 %v1293_v31 }
 0xc6f   :  { %2450 = vmatprep.subr.bf16.mxu1 %v2625_v0 }
 0xc73   :  { %2435 = vmatmul.mubr.msk.bf16.vlgmr.msra.gmra.mrb[36].mxu0 %vm265_vm2, %v1239_v15 }
 0xc74   :  { %2445 = vmatpush3.bf16.msra.mxu0 %v1369_v34  ;;  %2446 = vmatprep.mubr.msk.bf16.mxu0 %vm2626_vm0, %v2625_v0 }
 0xc75   :  { %2441 = vmatmul.mubr.msk.bf16.vlgmr.msra.gmra.mrb[32].mxu1 %vm265_vm2, %v1240_v33  ;;  %2456 = vmatprep.subr.bf16.mxu0 %v2625_v0 }
 0xc76   :  { %2451 = vmatpush3.bf16.msra.mxu1 %v1415_v35  ;;  %2452 = vmatprep.mubr.msk.bf16.mxu1 %vm2626_vm0, %v2625_v0 }
 0xc77   :  { %2462 = vmatprep.subr.bf16.mxu1 %v2625_v0 }
 0xd46   :  { %v1283_v37 = vpop.f32.mrb[36].mxu0 }
 0xd47   :  { %v1335_v38 = vmul.f32 0.25, %v1283_v37  ;;  %v2436_v39 = vpop.f32.mrb[37].mxu0 }
 0xd48   :  { %v1286_v42 = vpop.f32.mrb[38].mxu0  ;;  %v1329_v43 = vpop.f32.mrb[32].mxu1 }
 0xd49   :  { %v1336_v44 = vmul.f32 0.25, %v1329_v43  ;;  %v2437_v47 = vpop.f32.mrb[39].mxu0  ;;  %v2442_v48 = vpop.f32.mrb[33].mxu1  ;;  %v1337_v49 = vadd.f32 %v1335_v38, %v2806_v55 }
 0xd4a   :  { %v1332_v51 = vpop.f32.mrb[34].mxu1 }
 0xd4b   :  { %v2443_v53 = vpop.f32.mrb[35].mxu1  ;;  %v1339_v54 = vsel %vm372_vm4, %v1337_v49, -inf  ;;  %v1338_v56 = vadd.f32 %v1336_v44, %v2809_v59 }
 0xd4c   :  { %1340 = vmax.xlane.f32.xlu1 %v1339_v54 }
 0xd4d   :  { %v1342_v57 = vsel %vm372_vm4, %v1338_v56, -inf }
 0xd4e   :  { %1343 = vmax.xlane.f32.xlu0 %v1342_v57 }
 0xd5d   :  { %1461 = vrot.lane.b32.xlu1 %v1241_v23, %s2627_s25 }
 0xdd9   :  { %v1341_v58 = vpop.xlane.xlu1 %1340 }
 0xdda   :  { %v1345_v46 = vsub.f32 %v1337_v49, %v1341_v58 }
 0xddb   :  { %v1344_v60 = vpop.xlane.xlu0 %1343 }
 0xddc   :  { %v1347_v62 = vmul.f32 1.442695, %v1345_v46  ;;  %v1346_v13 = vsub.f32 %v1338_v56, %v1344_v60 }
 0xddd   :  { %v1462_v7 = vpop.permute.xlu1 %1461 }
 0xdde   :  { %2593 = vpow2.f32 %v1347_v62  ;;  %v1349_v63 = vmul.f32 1.442695, %v1346_v13  ;;  %v1467_v45 = vsel %vm265_vm2, %v1462_v7, 0 }
 0xde0   :  { %2595 = vpow2.f32 %v1349_v63 }
 0xde8   :  { %v2594_v1 = vpop.eup %2593 }
 0xde9   :  { %v1351_v2 = vsel %vm372_vm4, %v2594_v1, 0.0 }
 0xdea   :  { %v2596_v3 = vpop.eup %2595  ;;  %1352 = vadd.xlane.f32.xlu1 %v1351_v2 }
 0xdeb   :  { %v1354_v6 = vsel %vm372_vm4, %v2596_v3, 0.0 }
 0xdec   :  { %1355 = vadd.xlane.f32.xlu0 %v1354_v6 }
 0xdfb   :  { %1458 = vrot.lane.b32.xlu1 %v1239_v15, %s2627_s25 }
 0xdff   :  { %1510 = vrot.lane.b32.xlu1 %v1240_v33, %s2627_s25 }
 0xe02   :  { %1513 = vrot.lane.b32.xlu0 %v1242_v30, %s2627_s25 }
 0xe77   :  { %v1353_v8 = vpop.xlane.xlu1 %1352 }
 0xe78   :  { %2597 = vrcp.f32 %v1353_v8 }
 0xe79   :  { %v1356_v9 = vpop.xlane.xlu0 %1355 }
 0xe7a   :  { %2599 = vrcp.f32 %v1356_v9 }
 0xe7b   :  { %v1459_v25 = vpop.permute.xlu1 %1458 }
 0xe7d   :  { %v1514_v20 = vpop.permute.xlu0 %1513 }
 0xe7e   :  { %v1519_v23 = vsel %vm265_vm2, %v1514_v20, 0 }
 0xe7f   :  { %v1511_v22 = vpop.permute.xlu1 %1510 }
 0xe82   :  { %v2598_v16 = vpop.eup %2597 }
 0xe83   :  { %v1359_v5 = vmul.f32 %v2598_v16, %v2594_v1 }
 0xe84   :  { %v2600_v17 = vpop.eup %2599 }
 0xe85   :  { %v1360_v18 = vmul.f32 %v2600_v17, %v2596_v3  ;;  %v1361_v19 = vpack.c.bf16 %v1359_v5, %v1359_v5  ;;  %v2555_v17 = vld [vmem:[%s3169_s6 + $0x10] sm:$0xff]  }
 0xe87   :  { %2447 = vmatmul.mubr.msk.bf16.vlgmr.msra.gmra.mrb[40].mxu0 %vm372_vm4, %v1361_v19  ;;  %v1362_v21 = vpack.c.bf16 %v1360_v18, %v1360_v18  ;;  %v2556_v18 = vld [vmem:[%s3169_s6 + $0x18] sm:$0xff]  }
 0xe88   :  { %2457 = vmatpush3.bf16.xpose.msra.mxu0 %v1467_v45  ;;  %2458 = vmatprep.mubr.msk.bf16.mxu0 %vm2626_vm0, %v2625_v0 }
 0xe89   :  { %2453 = vmatmul.mubr.msk.bf16.vlgmr.msra.gmra.mrb[36].mxu1 %vm372_vm4, %v1362_v21  ;;  %2468 = vmatprep.subr.bf16.mxu0 %v2625_v0 }
 0xe8a   :  { %2463 = vmatpush3.bf16.xpose.msra.mxu1 %v1519_v23  ;;  %2464 = vmatprep.mubr.msk.bf16.mxu1 %vm2626_vm0, %v2625_v0 }
 0xe8b   :  { %2474 = vmatprep.subr.bf16.mxu1 %v2625_v0 }
 0xe8f   :  { %2459 = vmatmul.mubr.msk.bf16.vlgmr.msra.gmra.mrb[44].mxu0 %vm265_vm2, %v1459_v25 }
 0xe90   :  { %2470 = vmatprep.mubr.msk.bf16.mxu0 %vm2626_vm0, %v2625_v0 }
 0xe91   :  { %2465 = vmatmul.mubr.msk.bf16.vlgmr.msra.gmra.mrb[40].mxu1 %vm265_vm2, %v1511_v22 }
 0xe92   :  { %2476 = vmatprep.mubr.msk.bf16.mxu1 %vm2626_vm0, %v2625_v0 }
 0xf5a   :  { %v3042_v27 = vpop.f32.mrb[40].mxu0 }
 0xf5b   :  { %v2448_v29 = vpop.f32.mrb[41].mxu0 }
 0xf5c   :  { %v1408_v30 = vpop.f32.mrb[42].mxu0  ;;  %v3044_v12 = vpop.f32.mrb[36].mxu1 }
 0xf5d   :  { %v2449_v41 = vpop.f32.mrb[43].mxu0  ;;  %v2454_v31 = vpop.f32.mrb[37].mxu1 }
 0xf5e   :  { %v1454_v32 = vpop.f32.mrb[38].mxu1 }
 0xf5f   :  { %v2455_v15 = vpop.f32.mrb[39].mxu1 }
 0xf62   :  { %v1503_v34 = vpop.f32.mrb[44].mxu0 }
 0xf63   :  { %v1561_v33 = vmul.f32 0.25, %v1503_v34  ;;  %v2460_v35 = vpop.f32.mrb[45].mxu0 }
 0xf64   :  { %v1506_v37 = vpop.f32.mrb[46].mxu0  ;;  %v1555_v38 = vpop.f32.mrb[40].mxu1  ;;  %v1706_v35 = vrot.slane %v2986_v4, %v739_v52 }
 0xf65   :  { %v1562_v39 = vmul.f32 0.25, %v1555_v38  ;;  %v2461_v42 = vpop.f32.mrb[47].mxu0  ;;  %v2466_v43 = vpop.f32.mrb[41].mxu1  ;;  %v1563_v44 = vadd.f32 %v1561_v33, %v2806_v55 }
 0xf66   :  { %v1558_v47 = vpop.f32.mrb[42].mxu1 }
 0xf67   :  { %v2467_v48 = vpop.f32.mrb[43].mxu1  ;;  %v1565_v49 = vsel %vm372_vm4, %v1563_v44, -inf  ;;  %v1564_v51 = vadd.f32 %v1562_v39, %v2809_v59 }
 0xf68   :  { %1566 = vmax.xlane.f32.xlu1 %v1565_v49 }
 0xf69   :  { %v1568_v53 = vsel %vm372_vm4, %v1564_v51, -inf }
 0xf6a   :  { %1569 = vmax.xlane.f32.xlu0 %v1568_v53 }
 0xf79   :  { %1590 = vrot.lane.b32.xlu1 %v2999_v26, %s2627_s25 }
 0xff5   :  { %v1567_v54 = vpop.xlane.xlu1 %1566 }
 0xff6   :  { %v1571_v56 = vsub.f32 %v1563_v44, %v1567_v54 }
 0xff7   :  { %v1570_v57 = vpop.xlane.xlu0 %1569 }
 0xff8   :  { %v1573_v58 = vmul.f32 1.442695, %v1571_v56  ;;  %v1572_v46 = vsub.f32 %v1564_v51, %v1570_v57 }
 0xff9   :  { %v1591_v60 = vpop.permute.xlu1 %1590 }
 0xffa   :  { %2601 = vpow2.f32 %v1573_v58  ;;  %v1575_v55 = vmul.f32 1.442695, %v1572_v46  ;;  %v1596_v62 = vsel %vm402_vm3, %v1591_v60, 0  ;;  %v2558_v60 = vld [vmem:[%s3170_s7 + $0x18] sm:$0xff]  }
 0xffb   :  { %2469 = vmatpush3.bf16.msra.mxu0 %v1596_v62 }
 0xffc   :  { %2603 = vpow2.f32 %v1575_v55  ;;  %2480 = vmatprep.subr.bf16.mxu0 %v2625_v0 }
0x1004   :  { %v2602_v59 = vpop.eup %2601 }
0x1005   :  { %v1577_v13 = vsel %vm372_vm4, %v2602_v59, 0.0 }
0x1006   :  { %v2604_v63 = vpop.eup %2603  ;;  %1578 = vadd.xlane.f32.xlu0 %v1577_v13 }
0x1007   :  { %v1580_v26 = vsel %vm372_vm4, %v2604_v63, 0.0 }
0x100a   :  { %1581 = vadd.xlane.f32.xlu0 %v1580_v26 }
0x1020   :  { %1639 = vrot.lane.b32.xlu0 %v3002_v36, %s2627_s25 }
0x1093   :  { %v1579_v1 = vpop.xlane.xlu0 %1578 }
0x1094   :  { %2605 = vrcp.f32 %v1579_v1  ;;  %v1794_v1 = vrot.slane %v2986_v4, %v828_v24  ;;  %v2559_v24 = vld [vmem:[%s3171_s9 + $0x20] sm:$0xff]  }
0x1097   :  { %v1582_v2 = vpop.xlane.xlu0 %1581 }
0x1098   :  { %2607 = vrcp.f32 %v1582_v2 }
0x109b   :  { %v1640_v3 = vpop.permute.xlu0 %1639 }
0x109c   :  { %v1645_v6 = vsel %vm402_vm3, %v1640_v3, 0 }
0x109d   :  { %2475 = vmatpush3.bf16.msra.mxu1 %v1645_v6 }
0x109e   :  { %v2606_v7 = vpop.eup %2605  ;;  %2488 = vmatprep.subr.bf16.mxu1 %v2625_v0 }
0x109f   :  { %v1585_v8 = vmul.f32 %v2606_v7, %v2602_v59 }
0x10a1   :  { %v1587_v9 = vpack.c.bf16 %v1585_v8, %v1585_v8 }
0x10a2   :  { %v2608_v16 = vpop.eup %2607 }
0x10a3   :  { %v1586_v5 = vmul.f32 %v2608_v16, %v2604_v63  ;;  %2471 = vmatmul.mubr.msk.bf16.vlgmr.msra.gmra.mrb[48].mxu0 %vm372_vm4, %v1587_v9  ;;  %v1800_v9 = vrot.slane %v2986_v4, %v834_v28  ;;  %v2561_v28 = vld [vmem:[%s3171_s9 + $0x30] sm:$0xff]  }
0x10a4   :  { %2484 = vmatprep.mubr.msk.bf16.mxu0 %vm2626_vm0, %v2625_v0  ;;  %2481 = vmatpush3.bf16.msra.mxu0 %v2555_v17 }
0x10a5   :  { %v1588_v36 = vpack.c.bf16 %v1586_v5, %v1586_v5  ;;  %2482 = vmatprep.subr.bf16.mxu0 %v2625_v0 }
0x10a7   :  { %2477 = vmatmul.mubr.msk.bf16.vlgmr.msra.gmra.mrb[44].mxu1 %vm372_vm4, %v1588_v36 }
0x10a8   :  { %2492 = vmatprep.mubr.msk.bf16.mxu1 %vm2626_vm0, %v2625_v0  ;;  %2483 = vmatpush3.bf16.msra.mxu0 %v2556_v18  ;;  %v2560_v18 = vld [vmem:[%s3171_s9 + $0x28] sm:$0xff]  }
0x10a9   :  { %2496 = vmatprep.subr.bf16.mxu0 %v2625_v0 }
0x1176   :  { %v1632_v19 = vpop.f32.mrb[48].mxu0 }
0x1177   :  { %v2472_v20 = vpop.f32.mrb[49].mxu0 }
0x1178   :  { %v1635_v45 = vpop.f32.mrb[50].mxu0  ;;  %v2211_v20 = vld [vmem:[%s3172_s8 + $0x1] ss:$0 sm:$0xff] }
0x1179   :  { %v2473_v21 = vpop.f32.mrb[51].mxu0 }
0x117a   :  { %v1681_v23 = vpop.f32.mrb[44].mxu1 }
0x117b   :  { %v2528_v25 = vpack.i.bf16 %v1681_v23, %v1632_v19  ;;  %v2478_v22 = vpop.f32.mrb[45].mxu1  ;;  %v2562_v19 = vld [vmem:[%s3171_s9 + $0x38] sm:$0xff]  }
0x117c   :  { %v1684_v29 = vpop.f32.mrb[46].mxu1 }
0x117d   :  { %v2479_v30 = vpop.f32.mrb[47].mxu1  ;;  %2529 = vrot.lane.b32.xlu1 %v2528_v25, %s2629_s14 }
0x11ef   :  { %v2530_v41 = vpop.permute.xlu1 %2529 }
0x11f0   :  { %v2532_v31 = vunpack.i.h.bf16 %v2530_v41  ;;  %v2531_v32 = vunpack.i.l.bf16 %v2530_v41 }
0x11f2   :  { %v1696_v15 = vsel %vm265_vm2, %v3044_v12, %v2532_v31  ;;  %v1695_v34 = vsel %vm265_vm2, %v3042_v27, %v2531_v32 }
0x11f3   :  { %v1697_v33 = vpack.c.bf16 %v1696_v15, %v1695_v34 }
0x11f5   :  { %2485 = vmatmul.mubr.msk.bf16.vlgmr.msra.gmra.mrb[52].mxu0 %vm94_vm1, %v1697_v33 }
0x11f6   :  { %2504 = vmatprep.mubr.msk.bf16.mxu0 %vm2626_vm0, %v2625_v0  ;;  %2497 = vmatpush3.bf16.msra.mxu0 %v2559_v24 }
0x11f7   :  { %2498 = vmatprep.subr.bf16.mxu0 %v2625_v0 }
0x11fa   :  { %2499 = vmatpush3.bf16.msra.mxu0 %v2560_v18  ;;  %v2004_v18 = vrot.slane %v2986_v4, %v1036_v50  ;;  %v2229_v50 = vld [vmem:[%s3174_s12] ss:$0 sm:$0xff] }
0x11fb   :  { %2500 = vmatprep.subr.bf16.mxu0 %v2625_v0 }
0x11fe   :  { %2501 = vmatpush3.bf16.msra.mxu0 %v2561_v28 }
0x11ff   :  { %2502 = vmatprep.subr.bf16.mxu0 %v2625_v0 }
0x1202   :  { %2503 = vmatpush3.bf16.msra.mxu0 %v2562_v19 }
0x12c8   :  { %v1756_v37 = vpop.f32.mrb[52].mxu0 }
0x12c9   :  { %v1757_v38 = vadd.f32 %v1756_v37, %v1706_v35  ;;  %v2486_v39 = vpop.f32.mrb[53].mxu0 }
0x12ca   :  { %v1759_v42 = vpop.f32.mrb[54].mxu0 }
0x12cb   :  { %v1760_v43 = vadd.f32 %v1759_v42, %v1706_v35  ;;  %v2487_v44 = vpop.f32.mrb[55].mxu0  ;;  %v1763_v12 = vadd.f32 %v1757_v38, %v2960_v40 }
0x12cd   :  { %v1765_v27 = vsel %vm94_vm1, %v1763_v12, 0.0  ;;  %v1764_v47 = vadd.f32 %v1760_v43, %v2962_v61  ;;  %v2557_v61 = vld [vmem:[%s3170_s7 + $0x10] sm:$0xff]  }
0x12ce   :  { %1766 = vadd.xlane.f32.xlu1 %v1765_v27  ;;  %2489 = vmatpush3.bf16.msra.mxu1 %v2557_v61 }
0x12cf   :  { %v1768_v48 = vsel %vm94_vm1, %v1764_v47, 0.0  ;;  %2490 = vmatprep.subr.bf16.mxu1 %v2625_v0 }
0x12d0   :  { %1769 = vadd.xlane.f32.xlu0 %v1768_v48 }
0x12d2   :  { %2491 = vmatpush3.bf16.msra.mxu1 %v2558_v60 }
0x12d3   :  { %2508 = vmatprep.subr.bf16.mxu1 %v2625_v0 }
0x135b   :  { %v1767_v49 = vpop.xlane.xlu1 %1766 }
0x135c   :  { %v1771_v51 = vmul.f32 0.03125, %v1767_v49 }
0x135d   :  { %v1770_v53 = vpop.xlane.xlu0 %1769 }
0x135e   :  { %v1773_v52 = vsub.f32 %v1763_v12, %v1771_v51  ;;  %v1772_v54 = vmul.f32 0.03125, %v1770_v53  ;;  %v1904_v51 = vrot.slane %v2986_v4, %v935_v14 }
0x1360   :  { %v1774_v56 = vsub.f32 %v1764_v47, %v1772_v54  ;;  %v1775_v57 = vmul.f32 %v1773_v52, %v1773_v52 }
0x1362   :  { %v1777_v58 = vsel %vm94_vm1, %v1775_v57, 0.0  ;;  %v1776_v46 = vmul.f32 %v1774_v56, %v1774_v56 }
0x1363   :  { %1778 = vadd.xlane.f32.xlu0 %v1777_v58 }
0x1364   :  { %v1780_v40 = vsel %vm94_vm1, %v1776_v46, 0.0 }
0x1365   :  { %1781 = vadd.xlane.f32.xlu1 %v1780_v40 }
0x13f0   :  { %v1779_v55 = vpop.xlane.xlu0 %1778 }
0x13f1   :  { %v1783_v62 = vmul.f32 0.03125, %v1779_v55 }
0x13f2   :  { %v1782_v59 = vpop.xlane.xlu1 %1781 }
0x13f3   :  { %v1785_v13 = vadd.f32 1e-05, %v1783_v62  ;;  %v1784_v63 = vmul.f32 0.03125, %v1782_v59 }
0x13f5   :  { %2609 = vrsqrt.f32 %v1785_v13  ;;  %v1786_v26 = vadd.f32 1e-05, %v1784_v63 }
0x13f7   :  { %2611 = vrsqrt.f32 %v1786_v26 }
0x13ff   :  { %v2610_v2 = vpop.eup %2609 }
0x1400   :  { %v1789_v3 = vmul.f32 %v2610_v2, %v1773_v52 }
0x1401   :  { %v2612_v6 = vpop.eup %2611 }
0x1402   :  { %v1795_v7 = vmul.f32 %v1794_v1, %v1789_v3  ;;  %v1790_v8 = vmul.f32 %v2612_v6, %v1774_v56  ;;  %v2563_v6 = vld [vmem:[%s3173_s11] sm:$0xff]  }
0x1404   :  { %v1796_v16 = vmul.f32 %v1794_v1, %v1790_v8  ;;  %v1801_v5 = vadd.f32 %v1800_v9, %v1795_v7  ;;  %v2564_v7 = vld [vmem:[%s3173_s11 + $0x8] sm:$0xff]  }
0x1406   :  { %v1802_v36 = vadd.f32 %v1800_v9, %v1796_v16 }
0x1408   :  { %v1803_v17 = vpack.c.bf16 %v1802_v36, %v1801_v5 }
0x140a   :  { %2493 = vmatmul.mubr.msk.bf16.vlgmr.msra.gmra.mrb[48].mxu1 %vm94_vm1, %v1803_v17 }
0x140b   :  { %2512 = vmatprep.mubr.msk.bf16.mxu1 %vm2626_vm0, %v2625_v0  ;;  %2509 = vmatpush3.bf16.msra.mxu1 %v2563_v6 }
0x140c   :  { %2510 = vmatprep.subr.bf16.mxu1 %v2625_v0  ;;  %v2228_v0 = vld [vmem:[%s3167_s10 + $0x18] ss:$0 sm:$0xff] }
0x140f   :  { %2511 = vmatpush3.bf16.msra.mxu1 %v2564_v7 }
0x14dd   :  { %v1866_v45 = vpop.f32.mrb[48].mxu1 }
0x14de   :  { %v1867_v21 = vadd.f32 %v2211_v20, %v1866_v45  ;;  %v2494_v23 = vpop.f32.mrb[49].mxu1 }
0x14df   :  { %v1869_v25 = vpop.f32.mrb[50].mxu1 }
0x14e0   :  { %v1875_v22 = vmul.f32 0.044715, %v1867_v21  ;;  %v1870_v29 = vadd.f32 %v2211_v20, %v1869_v25  ;;  %v2495_v30 = vpop.f32.mrb[51].mxu1  ;;  %v1873_v44 = vmul.f32 0.5, %v1867_v21 }
0x14e2   :  { %v1877_v41 = vmul.f32 %v1875_v22, %v1867_v21  ;;  %v1876_v31 = vmul.f32 0.044715, %v1870_v29  ;;  %v1874_v12 = vmul.f32 0.5, %v1870_v29 }
0x14e4   :  { %v1879_v32 = vmul.f32 %v1877_v41, %v1867_v21  ;;  %v1878_v15 = vmul.f32 %v1876_v31, %v1870_v29  ;;  %v2098_v41 = vld [vmem:[%s3175_s2] sm:$0x3] }
0x14e6   :  { %v1881_v34 = vadd.f32 %v1879_v32, %v1867_v21  ;;  %v1880_v33 = vmul.f32 %v1878_v15, %v1870_v29 }
0x14e8   :  { %v1883_v35 = vmul.f32 0.7978846, %v1881_v34  ;;  %v1882_v37 = vadd.f32 %v1880_v33, %v1870_v29 }
0x14ea   :  { %2613 = vtanh.f32 %v1883_v35  ;;  %v1884_v38 = vmul.f32 0.7978846, %v1882_v37 }
0x14ec   :  { %2615 = vtanh.f32 %v1884_v38  ;;  %v2631_v38 = vmov 1  }
0x14ed   :  { %2533 = vset.pattern.permute.xlu1 %v2631_v38 }
0x14f4   :  { %v2614_v39 = vpop.eup %2613 }
0x14f5   :  { %v1887_v42 = vadd.f32 1.0, %v2614_v39 }
0x14f6   :  { %v2616_v43 = vpop.eup %2615 }
0x14f7   :  { %v1888_v27 = vadd.f32 1.0, %v2616_v43  ;;  %v1889_v47 = vmul.f32 %v1887_v42, %v1873_v44 }
0x14f9   :  { %v1890_v48 = vmul.f32 %v1888_v27, %v1874_v12 }
0x14fb   :  { %v1891_v49 = vpack.c.bf16 %v1890_v48, %v1889_v47 }
0x14fd   :  { %2505 = vmatmul.mubr.msk.bf16.vlgmr.msra.gmra.mrb[56].mxu0 %vm961_vm5, %v1891_v49 }
0x15d0   :  { %v1966_v53 = vpop.f32.mrb[56].mxu0 }
0x15d1   :  { %v1967_v52 = vadd.f32 %v1966_v53, %v1904_v51  ;;  %v2506_v54 = vpop.f32.mrb[57].mxu0 }
0x15d2   :  { %v1969_v56 = vpop.f32.mrb[58].mxu0 }
0x15d3   :  { %v1970_v57 = vadd.f32 %v1969_v56, %v1904_v51  ;;  %v2507_v58 = vpop.f32.mrb[59].mxu0  ;;  %v1973_v46 = vadd.f32 %v1967_v52, %v1801_v5 }
0x15d5   :  { %v1975_v40 = vsel %vm94_vm1, %v1973_v46, 0.0  ;;  %v1974_v61 = vadd.f32 %v1970_v57, %v1802_v36  ;;  %v2115_v57 = vand.u32 127, %v60_v10 }
0x15d6   :  { %1976 = vadd.xlane.f32.xlu1 %v1975_v40 }
0x15d7   :  { %v1978_v60 = vsel %vm94_vm1, %v1974_v61, 0.0  ;;  %vm2117_vm9 = vcmp.eq.s32.totalorder %v2115_v57, 1  ;;  %vm2116_vm10 = vcmp.eq.s32.totalorder %v2115_v57, 0 }
0x15d8   :  { %1979 = vadd.xlane.f32.xlu0 %v1978_v60 }
0x1663   :  { %v1977_v55 = vpop.xlane.xlu1 %1976 }
0x1664   :  { %v1981_v62 = vmul.f32 0.03125, %v1977_v55 }
0x1665   :  { %v1980_v59 = vpop.xlane.xlu0 %1979 }
0x1666   :  { %v1983_v13 = vsub.f32 %v1973_v46, %v1981_v62  ;;  %v1982_v63 = vmul.f32 0.03125, %v1980_v59 }
0x1668   :  { %v1984_v14 = vsub.f32 %v1974_v61, %v1982_v63  ;;  %v1985_v26 = vmul.f32 %v1983_v13, %v1983_v13 }
0x166a   :  { %v1987_v1 = vsel %vm94_vm1, %v1985_v26, 0.0  ;;  %v1986_v2 = vmul.f32 %v1984_v14, %v1984_v14 }
0x166b   :  { %1988 = vadd.xlane.f32.xlu1 %v1987_v1 }
0x166c   :  { %v1990_v3 = vsel %vm94_vm1, %v1986_v2, 0.0 }
0x166d   :  { %1991 = vadd.xlane.f32.xlu0 %v1990_v3 }
0x16f8   :  { %v1989_v8 = vpop.xlane.xlu1 %1988 }
0x16f9   :  { %v1993_v9 = vmul.f32 0.03125, %v1989_v8 }
0x16fa   :  { %v1992_v16 = vpop.xlane.xlu0 %1991 }
0x16fb   :  { %v1995_v5 = vadd.f32 1e-05, %v1993_v9  ;;  %v1994_v36 = vmul.f32 0.03125, %v1992_v16 }
0x16fd   :  { %2617 = vrsqrt.f32 %v1995_v5  ;;  %v1996_v17 = vadd.f32 1e-05, %v1994_v36 }
0x16ff   :  { %2619 = vrsqrt.f32 %v1996_v17 }
0x1707   :  { %v2618_v24 = vpop.eup %2617 }
0x1708   :  { %v1999_v28 = vmul.f32 %v2618_v24, %v1983_v13 }
0x1709   :  { %v2620_v19 = vpop.eup %2619 }
0x170a   :  { %v2000_v20 = vmul.f32 %v2620_v19, %v1984_v14  ;;  %v2005_v45 = vmul.f32 %v2004_v18, %v1999_v28 }
0x170c   :  { %v2006_v21 = vmul.f32 %v2004_v18, %v2000_v20  ;;  %v2011_v25 = vadd.f32 %v2228_v0, %v2005_v45 }
0x170e   :  { %v2012_v23 = vadd.f32 %v2228_v0, %v2006_v21 }
0x1710   :  { %v2014_v22 = vrot.slane %v2012_v23, 7 }
0x1712   :  { %v2017_v29 = vsel %vm2016_vm6, %v2011_v25, %v2014_v22 }
0x1713   :  { %v2018_v30 = vpack.c.bf16 %v2017_v29, %v2017_v29 }
0x1715   :  { %2513 = vmatmul.mubr.msk.bf16.vlgmr.msra.gmra.mrb[52].mxu1 %vm94_vm1, %v2018_v30 }
0x17e8   :  { %v2079_v4 = vpop.f32.mrb[52].mxu1 }
0x17e9   :  { %v2080_v31 = vadd.f32 %v2229_v50, %v2079_v4  ;;  %v2514_v32 = vpop.f32.mrb[53].mxu1 }
0x17ea   :  { %v2082_v15 = vpop.f32.mrb[54].mxu1 }
0x17eb   :  { %v2515_v34 = vpop.f32.mrb[55].mxu1  ;;  %v2086_v33 = vsel %vm2085_vm7, %v2080_v31, -inf  ;;  %v2099_v35 = vmul.f32 %v2098_v41, %v2080_v31 }
0x17ec   :  { %2087 = vmax.xlane.f32.xlu0 %v2086_v33 }
0x17ed   :  { %v2100_v37 = vsel %vm2085_vm7, %v2099_v35, 0.0 }
0x17f0   :  { %2101 = vadd.xlane.f32.xlu0 %v2100_v37 }
0x1806   :  { %2125 = vperm.xlu0 %2534, %v2080_v31  }
0x1879   :  { %v2088_v39 = vpop.xlane.xlu0 %2087 }
0x187a   :  { %v2089_v42 = vsub.f32 %v2080_v31, %v2088_v39 }
0x187c   :  { %v2090_v43 = vmul.f32 1.442695, %v2089_v42 }
0x187d   :  { %v2102_v51 = vpop.xlane.xlu0 %2101 }
0x187e   :  { %2621 = vpow2.f32 %v2090_v43 }
0x1885   :  { %v2126_v62 = vpop.permute.xlu0 %2125 }
0x1888   :  { %v2622_v44 = vpop.eup %2621 }
0x1889   :  { %v2092_v12 = vsel %vm2085_vm7, %v2622_v44, 0.0 }
0x188a   :  { %2093 = vadd.xlane.f32.xlu1 %v2092_v12 }
0x189b   :  { %2120 = vperm.xlu1 %2533, %v2080_v31  }
0x1917   :  { %v2094_v27 = vpop.xlane.xlu1 %2093 }
0x1918   :  { %2623 = vlog2.f32 %v2094_v27 }
0x191b   :  { %v2121_v40 = vpop.permute.xlu1 %2120 }
0x191c   :  { %v2123_v55 = vsel %vm2117_vm9, %v2121_v40, 0.0 }
0x191d   :  { %v2128_v13 = vsel %vm2116_vm10, %v2126_v62, %v2123_v55 }
0x1922   :  { %v2624_v47 = vpop.eup %2623 }
0x1923   :  { %v2096_v48 = vmul.f32 0.6931472, %v2624_v47 }
0x1925   :  { %v2097_v49 = vadd.f32 %v2096_v48, %v2088_v39 }
0x1927   :  { %v2103_v53 = vsub.f32 %v2097_v49, %v2102_v51 }
0x1929   :  { %v2105_v52 = vsel %vm2104_vm8, %v2103_v53, 0.0 }
0x192a   :  { %v2106_v54 = vrot.slane %v2105_v52, 4 }
0x192c   :  { %v2107_v56 = vadd.f32 %v2106_v54, %v2105_v52 }
0x192e   :  { %v2108_v58 = vrot.slane %v2107_v56, 2 }
0x1930   :  { %v2109_v46 = vadd.f32 %v2108_v58, %v2107_v56 }
0x1932   :  { %v2110_v61 = vrot.slane %v2109_v46, 1 }
0x1934   :  { %v2111_v60 = vadd.f32 %v2110_v61, %v2109_v46 }
0x1936   :  { %v2113_v59 = vmul.f32 0.5, %v2111_v60 }
0x1938   :  { %v2129_v63 = vsel %vm2104_vm8, %v2128_v13, %v2113_v59 }
0x1939   :  { %v2131_v14 = vsel %vm2130_vm11, %v2129_v63, 0.0 }
0x193a   :  { %2132 = vst [vmem:[%s3176_s13] sm:$0xff] %v2131_v14 }

</bundles_post_ra>
